<compile_context>
chip_gen: v6e
topology: v6e:2x2x1
jax: 0.10.0
libtpu: 0.0.40
codegen_flags: <defaults>
</compile_context>

<pallas_src>
import jax
import jax.numpy as jnp
from jax.experimental import pallas as pl
from jax.experimental.pallas import tpu as pltpu


def encoder_lstm_kernel(x_ref,
                        wih0_ref, whh0_ref, b0_ref,
                        wih1_ref, whh1_ref, b1_ref,
                        wih2_ref, whh2_ref, b2_ref,
                        h_out_ref, c_out_ref):
    """Runs 3 stacked LSTM layers over the full sequence inside one kernel."""
    T = x_ref.shape[0]
    H = whh0_ref.shape[0]

    def run_layer(x_seq, wih_ref, whh_ref, b_ref, collect_seq):
        # Hoisted input GEMM: one (T, in_dim) x (in_dim, 4H) matmul with the
        # bias folded in -> gates_in[t] is ready before the recurrence starts.
        gates_in = (jnp.dot(x_seq, wih_ref[...],
                            preferred_element_type=jnp.float32)
                    + b_ref[...])                       # (T, 4H)
        whh = whh_ref[...]                              # (H, 4H)

        h = jnp.zeros((1, H), jnp.float32)
        c = jnp.zeros((1, H), jnp.float32)
        hs = []
        for t in range(T):  # seq_len is small & static -> fully unrolled
            # Single MXU op on the serial chain.
            gates = gates_in[t:t + 1, :] + jnp.dot(
                h, whh, preferred_element_type=jnp.float32)   # (1, 4H)
            # Two full-width EUP passes instead of 4 sliced ones.
            sig = jax.nn.sigmoid(gates)
            tg = jnp.tanh(gates)
            i_g = sig[:, 0:H]          # PyTorch gate order [i, f, g, o]
            f_g = sig[:, H:2 * H]
            g_g = tg[:, 2 * H:3 * H]
            o_g = sig[:, 3 * H:4 * H]
            c = f_g * c + i_g * g_g
            h = o_g * jnp.tanh(c)
            if collect_seq:
                hs.append(h)
        seq_out = jnp.concatenate(hs, axis=0) if collect_seq else None
        return seq_out, h, c

    x0 = x_ref[...]                                           # (T, n_features)
    seq1, h0, c0 = run_layer(x0, wih0_ref, whh0_ref, b0_ref, collect_seq=True)
    seq2, h1, c1 = run_layer(seq1, wih1_ref, whh1_ref, b1_ref, collect_seq=True)
    _, h2, c2 = run_layer(seq2, wih2_ref, whh2_ref, b2_ref, collect_seq=False)

    # One (3, H) tile store per output instead of per-layer masked row stores.
    h_out_ref[...] = jnp.concatenate([h0, h1, h2], axis=0)
    c_out_ref[...] = jnp.concatenate([c0, c1, c2], axis=0)


def prepare_encoder_params(params):
    """One-time weight layout prep (outside the per-call wrapper):
    transpose to (in_dim, 4H) / (H, 4H) and fold b_ih + b_hh."""
    prepared = []
    for (w_ih, w_hh, b_ih, b_hh) in params:
        prepared.append((
            jnp.transpose(w_ih).astype(jnp.float32),            # (in_dim, 4H)
            jnp.transpose(w_hh).astype(jnp.float32),             # (H, 4H)
            (b_ih + b_hh).reshape(1, -1).astype(jnp.float32),    # (1, 4H)
        ))
    return prepared


def encoder_forward(x, prepared_params, seq_len, n_features, hidden_dim):
    """Mirrors Encoder.forward: reshape to (1, T, F), run 3-layer LSTM from
    zero states, return (hidden, cell) of shape (3, 1, H)."""
    x2d = x.reshape(seq_len, n_features).astype(jnp.float32)

    kernel_args = [x2d]
    for (wih_t, whh_t, b) in prepared_params:
        kernel_args.extend([wih_t, whh_t, b])

    vmem_spec = pl.BlockSpec(memory_space=pltpu.MemorySpace.VMEM)
    hidden, cell = pl.pallas_call(
        encoder_lstm_kernel,
        out_shape=(jax.ShapeDtypeStruct((3, hidden_dim), jnp.float32),
                   jax.ShapeDtypeStruct((3, hidden_dim), jnp.float32)),
        in_specs=[vmem_spec] * len(kernel_args),
        out_specs=(vmem_spec, vmem_spec),
    )(*kernel_args)

    return hidden.reshape(3, 1, hidden_dim), cell.reshape(3, 1, hidden_dim)


def lstm_reference(x, params, seq_len, n_features, hidden_dim):
    """Pure-JAX reference matching torch.nn.LSTM (eval mode) semantics."""
    H = hidden_dim
    inp = x.reshape(seq_len, n_features).astype(jnp.float32)
    h_fin, c_fin = [], []
    for (w_ih, w_hh, b_ih, b_hh) in params:
        h = jnp.zeros((H,), jnp.float32)
        c = jnp.zeros((H,), jnp.float32)
        outs = []
        for t in range(seq_len):
            gates = w_ih @ inp[t] + b_ih + w_hh @ h + b_hh
            i = jax.nn.sigmoid(gates[0:H])
            f = jax.nn.sigmoid(gates[H:2 * H])
            g = jnp.tanh(gates[2 * H:3 * H])
            o = jax.nn.sigmoid(gates[3 * H:4 * H])
            c = f * c + i * g
            h = o * jnp.tanh(c)
            outs.append(h)
        inp = jnp.stack(outs)
        h_fin.append(h)
        c_fin.append(c)
    return jnp.stack(h_fin)[:, None, :], jnp.stack(c_fin)[:, None, :]


def init_params(key, n_features, hidden_dim, num_layers=3):
    """Deterministic init mimicking PyTorch LSTM: U(-1/sqrt(H), 1/sqrt(H))."""
    k = 1.0 / jnp.sqrt(jnp.float32(hidden_dim))
    params = []
    for layer in range(num_layers):
        in_dim = n_features if layer == 0 else hidden_dim
        key, k1, k2, k3, k4 = jax.random.split(key, 5)
        w_ih = jax.random.uniform(k1, (4 * hidden_dim, in_dim), jnp.float32, -k, k)
        w_hh = jax.random.uniform(k2, (4 * hidden_dim, hidden_dim), jnp.float32, -k, k)
        b_ih = jax.random.uniform(k3, (4 * hidden_dim,), jnp.float32, -k, k)
        b_hh = jax.random.uniform(k4, (4 * hidden_dim,), jnp.float32, -k, k)
        params.append((w_ih, w_hh, b_ih, b_hh))
    return params


if __name__ == "__main__":
    seq_len = 8
    n_features = 4
    embedding_dim = 32   # hidden_dim == embedding_dim in the module

    key = jax.random.PRNGKey(0)
    key, xk = jax.random.split(key)
    # Input: anything reshapeable to (1, seq_len, n_features)
    x = jax.random.normal(xk, (seq_len, n_features), jnp.float32)

    params = init_params(key, n_features, embedding_dim, num_layers=3)
    prepared = prepare_encoder_params(params)   # one-time layout prep

    hidden, cell = encoder_forward(x, prepared, seq_len, n_features, embedding_dim)
    hidden = jax.block_until_ready(hidden)
    cell = jax.block_until_ready(cell)

    h_ref, c_ref = lstm_reference(x, params, seq_len, n_features, embedding_dim)

    assert hidden.shape == (3, 1, embedding_dim)
    assert cell.shape == (3, 1, embedding_dim)
    assert jnp.allclose(hidden, h_ref, atol=1e-5, rtol=1e-5)
    assert jnp.allclose(cell, c_ref, atol=1e-5, rtol=1e-5)

    print("KERNEL_OK")
</pallas_src>

<mosaic_0001>
module attributes {stable_mosaic.version = 11 : i64} {
  func.func @encoder_lstm_kernel(%arg0: memref<8x4xf32, #tpu.memory_space<vmem>>, %arg1: memref<4x128xf32, #tpu.memory_space<vmem>>, %arg2: memref<32x128xf32, #tpu.memory_space<vmem>>, %arg3: memref<1x128xf32, #tpu.memory_space<vmem>>, %arg4: memref<32x128xf32, #tpu.memory_space<vmem>>, %arg5: memref<32x128xf32, #tpu.memory_space<vmem>>, %arg6: memref<1x128xf32, #tpu.memory_space<vmem>>, %arg7: memref<32x128xf32, #tpu.memory_space<vmem>>, %arg8: memref<32x128xf32, #tpu.memory_space<vmem>>, %arg9: memref<1x128xf32, #tpu.memory_space<vmem>>, %arg10: memref<3x32xf32, #tpu.memory_space<vmem>>, %arg11: memref<3x32xf32, #tpu.memory_space<vmem>>) attributes {dimension_semantics = [], scalar_prefetch = 0 : i64, scratch_operands = 0 : i64, tpu.core_type = #tpu.core_type<tc>} {
    %c0 = arith.constant 0 : index
    %c0_0 = arith.constant 0 : index
    %0 = vector.load %arg0[%c0, %c0_0] : memref<8x4xf32, #tpu.memory_space<vmem>>, vector<8x4xf32>
    %c0_1 = arith.constant 0 : index
    %c0_2 = arith.constant 0 : index
    %1 = vector.load %arg1[%c0_1, %c0_2] : memref<4x128xf32, #tpu.memory_space<vmem>>, vector<4x128xf32>
    %cst = arith.constant dense<0.000000e+00> : vector<8x128xf32>
    %2 = tpu.matmul %0, %1, %cst {dimension_numbers = #tpu.dot_dimension_numbers<[1], [0], [0], [1], [0, 0, 1, 1], [], []>} : vector<8x4xf32>, vector<4x128xf32>, vector<8x128xf32> -> vector<8x128xf32>
    %c0_3 = arith.constant 0 : index
    %c0_4 = arith.constant 0 : index
    %3 = vector.load %arg3[%c0_3, %c0_4] : memref<1x128xf32, #tpu.memory_space<vmem>>, vector<1x128xf32>
    %4 = vector.broadcast %3 : vector<1x128xf32> to vector<8x128xf32>
    %5 = arith.addf %2, %4 : vector<8x128xf32>
    %c0_5 = arith.constant 0 : index
    %c0_6 = arith.constant 0 : index
    %6 = vector.load %arg2[%c0_5, %c0_6] : memref<32x128xf32, #tpu.memory_space<vmem>>, vector<32x128xf32>
    %cst_7 = arith.constant 0.000000e+00 : f32
    %7 = vector.broadcast %cst_7 : f32 to vector<1x32xf32>
    %cst_8 = arith.constant 0.000000e+00 : f32
    %8 = vector.broadcast %cst_8 : f32 to vector<1x32xf32>
    %9 = vector.extract_strided_slice %5 {offsets = [0, 0], sizes = [1, 128], strides = [1, 1]} : vector<8x128xf32> to vector<1x128xf32>
    %cst_9 = arith.constant dense<0.000000e+00> : vector<1x128xf32>
    %10 = tpu.matmul %7, %6, %cst_9 {dimension_numbers = #tpu.dot_dimension_numbers<[1], [0], [0], [1], [0, 0, 1, 1], [], []>} : vector<1x32xf32>, vector<32x128xf32>, vector<1x128xf32> -> vector<1x128xf32>
    %11 = arith.addf %9, %10 : vector<1x128xf32>
    %12 = arith.negf %11 : vector<1x128xf32>
    %13 = math.exp %12 : vector<1x128xf32>
    %cst_10 = arith.constant 1.000000e+00 : f32
    %14 = vector.broadcast %cst_10 : f32 to vector<1x128xf32>
    %15 = arith.addf %14, %13 : vector<1x128xf32>
    %16 = arith.divf %14, %15 : vector<1x128xf32>
    %17 = math.tanh %11 : vector<1x128xf32>
    %18 = vector.extract_strided_slice %16 {offsets = [0, 0], sizes = [1, 32], strides = [1, 1]} : vector<1x128xf32> to vector<1x32xf32>
    %19 = vector.extract_strided_slice %16 {offsets = [0, 32], sizes = [1, 32], strides = [1, 1]} : vector<1x128xf32> to vector<1x32xf32>
    %20 = vector.extract_strided_slice %17 {offsets = [0, 64], sizes = [1, 32], strides = [1, 1]} : vector<1x128xf32> to vector<1x32xf32>
    %21 = vector.extract_strided_slice %16 {offsets = [0, 96], sizes = [1, 32], strides = [1, 1]} : vector<1x128xf32> to vector<1x32xf32>
    %22 = arith.mulf %19, %8 : vector<1x32xf32>
    %23 = arith.mulf %18, %20 : vector<1x32xf32>
    %24 = arith.addf %22, %23 : vector<1x32xf32>
    %25 = math.tanh %24 : vector<1x32xf32>
    %26 = arith.mulf %21, %25 : vector<1x32xf32>
    %27 = vector.extract_strided_slice %5 {offsets = [1, 0], sizes = [1, 128], strides = [1, 1]} : vector<8x128xf32> to vector<1x128xf32>
    %cst_11 = arith.constant dense<0.000000e+00> : vector<1x128xf32>
    %28 = tpu.matmul %26, %6, %cst_11 {dimension_numbers = #tpu.dot_dimension_numbers<[1], [0], [0], [1], [0, 0, 1, 1], [], []>} : vector<1x32xf32>, vector<32x128xf32>, vector<1x128xf32> -> vector<1x128xf32>
    %29 = arith.addf %27, %28 : vector<1x128xf32>
    %30 = arith.negf %29 : vector<1x128xf32>
    %31 = math.exp %30 : vector<1x128xf32>
    %cst_12 = arith.constant 1.000000e+00 : f32
    %32 = vector.broadcast %cst_12 : f32 to vector<1x128xf32>
    %33 = arith.addf %32, %31 : vector<1x128xf32>
    %34 = arith.divf %32, %33 : vector<1x128xf32>
    %35 = math.tanh %29 : vector<1x128xf32>
    %36 = vector.extract_strided_slice %34 {offsets = [0, 0], sizes = [1, 32], strides = [1, 1]} : vector<1x128xf32> to vector<1x32xf32>
    %37 = vector.extract_strided_slice %34 {offsets = [0, 32], sizes = [1, 32], strides = [1, 1]} : vector<1x128xf32> to vector<1x32xf32>
    %38 = vector.extract_strided_slice %35 {offsets = [0, 64], sizes = [1, 32], strides = [1, 1]} : vector<1x128xf32> to vector<1x32xf32>
    %39 = vector.extract_strided_slice %34 {offsets = [0, 96], sizes = [1, 32], strides = [1, 1]} : vector<1x128xf32> to vector<1x32xf32>
    %40 = arith.mulf %37, %24 : vector<1x32xf32>
    %41 = arith.mulf %36, %38 : vector<1x32xf32>
    %42 = arith.addf %40, %41 : vector<1x32xf32>
    %43 = math.tanh %42 : vector<1x32xf32>
    %44 = arith.mulf %39, %43 : vector<1x32xf32>
    %45 = vector.extract_strided_slice %5 {offsets = [2, 0], sizes = [1, 128], strides = [1, 1]} : vector<8x128xf32> to vector<1x128xf32>
    %cst_13 = arith.constant dense<0.000000e+00> : vector<1x128xf32>
    %46 = tpu.matmul %44, %6, %cst_13 {dimension_numbers = #tpu.dot_dimension_numbers<[1], [0], [0], [1], [0, 0, 1, 1], [], []>} : vector<1x32xf32>, vector<32x128xf32>, vector<1x128xf32> -> vector<1x128xf32>
    %47 = arith.addf %45, %46 : vector<1x128xf32>
    %48 = arith.negf %47 : vector<1x128xf32>
    %49 = math.exp %48 : vector<1x128xf32>
    %cst_14 = arith.constant 1.000000e+00 : f32
    %50 = vector.broadcast %cst_14 : f32 to vector<1x128xf32>
    %51 = arith.addf %50, %49 : vector<1x128xf32>
    %52 = arith.divf %50, %51 : vector<1x128xf32>
    %53 = math.tanh %47 : vector<1x128xf32>
    %54 = vector.extract_strided_slice %52 {offsets = [0, 0], sizes = [1, 32], strides = [1, 1]} : vector<1x128xf32> to vector<1x32xf32>
    %55 = vector.extract_strided_slice %52 {offsets = [0, 32], sizes = [1, 32], strides = [1, 1]} : vector<1x128xf32> to vector<1x32xf32>
    %56 = vector.extract_strided_slice %53 {offsets = [0, 64], sizes = [1, 32], strides = [1, 1]} : vector<1x128xf32> to vector<1x32xf32>
    %57 = vector.extract_strided_slice %52 {offsets = [0, 96], sizes = [1, 32], strides = [1, 1]} : vector<1x128xf32> to vector<1x32xf32>
    %58 = arith.mulf %55, %42 : vector<1x32xf32>
    %59 = arith.mulf %54, %56 : vector<1x32xf32>
    %60 = arith.addf %58, %59 : vector<1x32xf32>
    %61 = math.tanh %60 : vector<1x32xf32>
    %62 = arith.mulf %57, %61 : vector<1x32xf32>
    %63 = vector.extract_strided_slice %5 {offsets = [3, 0], sizes = [1, 128], strides = [1, 1]} : vector<8x128xf32> to vector<1x128xf32>
    %cst_15 = arith.constant dense<0.000000e+00> : vector<1x128xf32>
    %64 = tpu.matmul %62, %6, %cst_15 {dimension_numbers = #tpu.dot_dimension_numbers<[1], [0], [0], [1], [0, 0, 1, 1], [], []>} : vector<1x32xf32>, vector<32x128xf32>, vector<1x128xf32> -> vector<1x128xf32>
    %65 = arith.addf %63, %64 : vector<1x128xf32>
    %66 = arith.negf %65 : vector<1x128xf32>
    %67 = math.exp %66 : vector<1x128xf32>
    %cst_16 = arith.constant 1.000000e+00 : f32
    %68 = vector.broadcast %cst_16 : f32 to vector<1x128xf32>
    %69 = arith.addf %68, %67 : vector<1x128xf32>
    %70 = arith.divf %68, %69 : vector<1x128xf32>
    %71 = math.tanh %65 : vector<1x128xf32>
    %72 = vector.extract_strided_slice %70 {offsets = [0, 0], sizes = [1, 32], strides = [1, 1]} : vector<1x128xf32> to vector<1x32xf32>
    %73 = vector.extract_strided_slice %70 {offsets = [0, 32], sizes = [1, 32], strides = [1, 1]} : vector<1x128xf32> to vector<1x32xf32>
    %74 = vector.extract_strided_slice %71 {offsets = [0, 64], sizes = [1, 32], strides = [1, 1]} : vector<1x128xf32> to vector<1x32xf32>
    %75 = vector.extract_strided_slice %70 {offsets = [0, 96], sizes = [1, 32], strides = [1, 1]} : vector<1x128xf32> to vector<1x32xf32>
    %76 = arith.mulf %73, %60 : vector<1x32xf32>
    %77 = arith.mulf %72, %74 : vector<1x32xf32>
    %78 = arith.addf %76, %77 : vector<1x32xf32>
    %79 = math.tanh %78 : vector<1x32xf32>
    %80 = arith.mulf %75, %79 : vector<1x32xf32>
    %81 = vector.extract_strided_slice %5 {offsets = [4, 0], sizes = [1, 128], strides = [1, 1]} : vector<8x128xf32> to vector<1x128xf32>
    %cst_17 = arith.constant dense<0.000000e+00> : vector<1x128xf32>
    %82 = tpu.matmul %80, %6, %cst_17 {dimension_numbers = #tpu.dot_dimension_numbers<[1], [0], [0], [1], [0, 0, 1, 1], [], []>} : vector<1x32xf32>, vector<32x128xf32>, vector<1x128xf32> -> vector<1x128xf32>
    %83 = arith.addf %81, %82 : vector<1x128xf32>
    %84 = arith.negf %83 : vector<1x128xf32>
    %85 = math.exp %84 : vector<1x128xf32>
    %cst_18 = arith.constant 1.000000e+00 : f32
    %86 = vector.broadcast %cst_18 : f32 to vector<1x128xf32>
    %87 = arith.addf %86, %85 : vector<1x128xf32>
    %88 = arith.divf %86, %87 : vector<1x128xf32>
    %89 = math.tanh %83 : vector<1x128xf32>
    %90 = vector.extract_strided_slice %88 {offsets = [0, 0], sizes = [1, 32], strides = [1, 1]} : vector<1x128xf32> to vector<1x32xf32>
    %91 = vector.extract_strided_slice %88 {offsets = [0, 32], sizes = [1, 32], strides = [1, 1]} : vector<1x128xf32> to vector<1x32xf32>
    %92 = vector.extract_strided_slice %89 {offsets = [0, 64], sizes = [1, 32], strides = [1, 1]} : vector<1x128xf32> to vector<1x32xf32>
    %93 = vector.extract_strided_slice %88 {offsets = [0, 96], sizes = [1, 32], strides = [1, 1]} : vector<1x128xf32> to vector<1x32xf32>
    %94 = arith.mulf %91, %78 : vector<1x32xf32>
    %95 = arith.mulf %90, %92 : vector<1x32xf32>
    %96 = arith.addf %94, %95 : vector<1x32xf32>
    %97 = math.tanh %96 : vector<1x32xf32>
    %98 = arith.mulf %93, %97 : vector<1x32xf32>
    %99 = vector.extract_strided_slice %5 {offsets = [5, 0], sizes = [1, 128], strides = [1, 1]} : vector<8x128xf32> to vector<1x128xf32>
    %cst_19 = arith.constant dense<0.000000e+00> : vector<1x128xf32>
    %100 = tpu.matmul %98, %6, %cst_19 {dimension_numbers = #tpu.dot_dimension_numbers<[1], [0], [0], [1], [0, 0, 1, 1], [], []>} : vector<1x32xf32>, vector<32x128xf32>, vector<1x128xf32> -> vector<1x128xf32>
    %101 = arith.addf %99, %100 : vector<1x128xf32>
    %102 = arith.negf %101 : vector<1x128xf32>
    %103 = math.exp %102 : vector<1x128xf32>
    %cst_20 = arith.constant 1.000000e+00 : f32
    %104 = vector.broadcast %cst_20 : f32 to vector<1x128xf32>
    %105 = arith.addf %104, %103 : vector<1x128xf32>
    %106 = arith.divf %104, %105 : vector<1x128xf32>
    %107 = math.tanh %101 : vector<1x128xf32>
    %108 = vector.extract_strided_slice %106 {offsets = [0, 0], sizes = [1, 32], strides = [1, 1]} : vector<1x128xf32> to vector<1x32xf32>
    %109 = vector.extract_strided_slice %106 {offsets = [0, 32], sizes = [1, 32], strides = [1, 1]} : vector<1x128xf32> to vector<1x32xf32>
    %110 = vector.extract_strided_slice %107 {offsets = [0, 64], sizes = [1, 32], strides = [1, 1]} : vector<1x128xf32> to vector<1x32xf32>
    %111 = vector.extract_strided_slice %106 {offsets = [0, 96], sizes = [1, 32], strides = [1, 1]} : vector<1x128xf32> to vector<1x32xf32>
    %112 = arith.mulf %109, %96 : vector<1x32xf32>
    %113 = arith.mulf %108, %110 : vector<1x32xf32>
    %114 = arith.addf %112, %113 : vector<1x32xf32>
    %115 = math.tanh %114 : vector<1x32xf32>
    %116 = arith.mulf %111, %115 : vector<1x32xf32>
    %117 = vector.extract_strided_slice %5 {offsets = [6, 0], sizes = [1, 128], strides = [1, 1]} : vector<8x128xf32> to vector<1x128xf32>
    %cst_21 = arith.constant dense<0.000000e+00> : vector<1x128xf32>
    %118 = tpu.matmul %116, %6, %cst_21 {dimension_numbers = #tpu.dot_dimension_numbers<[1], [0], [0], [1], [0, 0, 1, 1], [], []>} : vector<1x32xf32>, vector<32x128xf32>, vector<1x128xf32> -> vector<1x128xf32>
    %119 = arith.addf %117, %118 : vector<1x128xf32>
    %120 = arith.negf %119 : vector<1x128xf32>
    %121 = math.exp %120 : vector<1x128xf32>
    %cst_22 = arith.constant 1.000000e+00 : f32
    %122 = vector.broadcast %cst_22 : f32 to vector<1x128xf32>
    %123 = arith.addf %122, %121 : vector<1x128xf32>
    %124 = arith.divf %122, %123 : vector<1x128xf32>
    %125 = math.tanh %119 : vector<1x128xf32>
    %126 = vector.extract_strided_slice %124 {offsets = [0, 0], sizes = [1, 32], strides = [1, 1]} : vector<1x128xf32> to vector<1x32xf32>
    %127 = vector.extract_strided_slice %124 {offsets = [0, 32], sizes = [1, 32], strides = [1, 1]} : vector<1x128xf32> to vector<1x32xf32>
    %128 = vector.extract_strided_slice %125 {offsets = [0, 64], sizes = [1, 32], strides = [1, 1]} : vector<1x128xf32> to vector<1x32xf32>
    %129 = vector.extract_strided_slice %124 {offsets = [0, 96], sizes = [1, 32], strides = [1, 1]} : vector<1x128xf32> to vector<1x32xf32>
    %130 = arith.mulf %127, %114 : vector<1x32xf32>
    %131 = arith.mulf %126, %128 : vector<1x32xf32>
    %132 = arith.addf %130, %131 : vector<1x32xf32>
    %133 = math.tanh %132 : vector<1x32xf32>
    %134 = arith.mulf %129, %133 : vector<1x32xf32>
    %135 = vector.extract_strided_slice %5 {offsets = [7, 0], sizes = [1, 128], strides = [1, 1]} : vector<8x128xf32> to vector<1x128xf32>
    %cst_23 = arith.constant dense<0.000000e+00> : vector<1x128xf32>
    %136 = tpu.matmul %134, %6, %cst_23 {dimension_numbers = #tpu.dot_dimension_numbers<[1], [0], [0], [1], [0, 0, 1, 1], [], []>} : vector<1x32xf32>, vector<32x128xf32>, vector<1x128xf32> -> vector<1x128xf32>
    %137 = arith.addf %135, %136 : vector<1x128xf32>
    %138 = arith.negf %137 : vector<1x128xf32>
    %139 = math.exp %138 : vector<1x128xf32>
    %cst_24 = arith.constant 1.000000e+00 : f32
    %140 = vector.broadcast %cst_24 : f32 to vector<1x128xf32>
    %141 = arith.addf %140, %139 : vector<1x128xf32>
    %142 = arith.divf %140, %141 : vector<1x128xf32>
    %143 = math.tanh %137 : vector<1x128xf32>
    %144 = vector.extract_strided_slice %142 {offsets = [0, 0], sizes = [1, 32], strides = [1, 1]} : vector<1x128xf32> to vector<1x32xf32>
    %145 = vector.extract_strided_slice %142 {offsets = [0, 32], sizes = [1, 32], strides = [1, 1]} : vector<1x128xf32> to vector<1x32xf32>
    %146 = vector.extract_strided_slice %143 {offsets = [0, 64], sizes = [1, 32], strides = [1, 1]} : vector<1x128xf32> to vector<1x32xf32>
    %147 = vector.extract_strided_slice %142 {offsets = [0, 96], sizes = [1, 32], strides = [1, 1]} : vector<1x128xf32> to vector<1x32xf32>
    %148 = arith.mulf %145, %132 : vector<1x32xf32>
    %149 = arith.mulf %144, %146 : vector<1x32xf32>
    %150 = arith.addf %148, %149 : vector<1x32xf32>
    %151 = math.tanh %150 : vector<1x32xf32>
    %152 = arith.mulf %147, %151 : vector<1x32xf32>
    %153 = tpu.concatenate %26, %44, %62, %80, %98, %116, %134, %152 in 0 : vector<1x32xf32>, vector<1x32xf32>, vector<1x32xf32>, vector<1x32xf32>, vector<1x32xf32>, vector<1x32xf32>, vector<1x32xf32>, vector<1x32xf32> -> vector<8x32xf32>
    %c0_25 = arith.constant 0 : index
    %c0_26 = arith.constant 0 : index
    %154 = vector.load %arg4[%c0_25, %c0_26] : memref<32x128xf32, #tpu.memory_space<vmem>>, vector<32x128xf32>
    %cst_27 = arith.constant dense<0.000000e+00> : vector<8x128xf32>
    %155 = tpu.matmul %153, %154, %cst_27 {dimension_numbers = #tpu.dot_dimension_numbers<[1], [0], [0], [1], [0, 0, 1, 1], [], []>} : vector<8x32xf32>, vector<32x128xf32>, vector<8x128xf32> -> vector<8x128xf32>
    %c0_28 = arith.constant 0 : index
    %c0_29 = arith.constant 0 : index
    %156 = vector.load %arg6[%c0_28, %c0_29] : memref<1x128xf32, #tpu.memory_space<vmem>>, vector<1x128xf32>
    %157 = vector.broadcast %156 : vector<1x128xf32> to vector<8x128xf32>
    %158 = arith.addf %155, %157 : vector<8x128xf32>
    %c0_30 = arith.constant 0 : index
    %c0_31 = arith.constant 0 : index
    %159 = vector.load %arg5[%c0_30, %c0_31] : memref<32x128xf32, #tpu.memory_space<vmem>>, vector<32x128xf32>
    %cst_32 = arith.constant 0.000000e+00 : f32
    %160 = vector.broadcast %cst_32 : f32 to vector<1x32xf32>
    %cst_33 = arith.constant 0.000000e+00 : f32
    %161 = vector.broadcast %cst_33 : f32 to vector<1x32xf32>
    %162 = vector.extract_strided_slice %158 {offsets = [0, 0], sizes = [1, 128], strides = [1, 1]} : vector<8x128xf32> to vector<1x128xf32>
    %cst_34 = arith.constant dense<0.000000e+00> : vector<1x128xf32>
    %163 = tpu.matmul %160, %159, %cst_34 {dimension_numbers = #tpu.dot_dimension_numbers<[1], [0], [0], [1], [0, 0, 1, 1], [], []>} : vector<1x32xf32>, vector<32x128xf32>, vector<1x128xf32> -> vector<1x128xf32>
    %164 = arith.addf %162, %163 : vector<1x128xf32>
    %165 = arith.negf %164 : vector<1x128xf32>
    %166 = math.exp %165 : vector<1x128xf32>
    %cst_35 = arith.constant 1.000000e+00 : f32
    %167 = vector.broadcast %cst_35 : f32 to vector<1x128xf32>
    %168 = arith.addf %167, %166 : vector<1x128xf32>
    %169 = arith.divf %167, %168 : vector<1x128xf32>
    %170 = math.tanh %164 : vector<1x128xf32>
    %171 = vector.extract_strided_slice %169 {offsets = [0, 0], sizes = [1, 32], strides = [1, 1]} : vector<1x128xf32> to vector<1x32xf32>
    %172 = vector.extract_strided_slice %169 {offsets = [0, 32], sizes = [1, 32], strides = [1, 1]} : vector<1x128xf32> to vector<1x32xf32>
    %173 = vector.extract_strided_slice %170 {offsets = [0, 64], sizes = [1, 32], strides = [1, 1]} : vector<1x128xf32> to vector<1x32xf32>
    %174 = vector.extract_strided_slice %169 {offsets = [0, 96], sizes = [1, 32], strides = [1, 1]} : vector<1x128xf32> to vector<1x32xf32>
    %175 = arith.mulf %172, %161 : vector<1x32xf32>
    %176 = arith.mulf %171, %173 : vector<1x32xf32>
    %177 = arith.addf %175, %176 : vector<1x32xf32>
    %178 = math.tanh %177 : vector<1x32xf32>
    %179 = arith.mulf %174, %178 : vector<1x32xf32>
    %180 = vector.extract_strided_slice %158 {offsets = [1, 0], sizes = [1, 128], strides = [1, 1]} : vector<8x128xf32> to vector<1x128xf32>
    %cst_36 = arith.constant dense<0.000000e+00> : vector<1x128xf32>
    %181 = tpu.matmul %179, %159, %cst_36 {dimension_numbers = #tpu.dot_dimension_numbers<[1], [0], [0], [1], [0, 0, 1, 1], [], []>} : vector<1x32xf32>, vector<32x128xf32>, vector<1x128xf32> -> vector<1x128xf32>
    %182 = arith.addf %180, %181 : vector<1x128xf32>
    %183 = arith.negf %182 : vector<1x128xf32>
    %184 = math.exp %183 : vector<1x128xf32>
    %cst_37 = arith.constant 1.000000e+00 : f32
    %185 = vector.broadcast %cst_37 : f32 to vector<1x128xf32>
    %186 = arith.addf %185, %184 : vector<1x128xf32>
    %187 = arith.divf %185, %186 : vector<1x128xf32>
    %188 = math.tanh %182 : vector<1x128xf32>
    %189 = vector.extract_strided_slice %187 {offsets = [0, 0], sizes = [1, 32], strides = [1, 1]} : vector<1x128xf32> to vector<1x32xf32>
    %190 = vector.extract_strided_slice %187 {offsets = [0, 32], sizes = [1, 32], strides = [1, 1]} : vector<1x128xf32> to vector<1x32xf32>
    %191 = vector.extract_strided_slice %188 {offsets = [0, 64], sizes = [1, 32], strides = [1, 1]} : vector<1x128xf32> to vector<1x32xf32>
    %192 = vector.extract_strided_slice %187 {offsets = [0, 96], sizes = [1, 32], strides = [1, 1]} : vector<1x128xf32> to vector<1x32xf32>
    %193 = arith.mulf %190, %177 : vector<1x32xf32>
    %194 = arith.mulf %189, %191 : vector<1x32xf32>
    %195 = arith.addf %193, %194 : vector<1x32xf32>
    %196 = math.tanh %195 : vector<1x32xf32>
    %197 = arith.mulf %192, %196 : vector<1x32xf32>
    %198 = vector.extract_strided_slice %158 {offsets = [2, 0], sizes = [1, 128], strides = [1, 1]} : vector<8x128xf32> to vector<1x128xf32>
    %cst_38 = arith.constant dense<0.000000e+00> : vector<1x128xf32>
    %199 = tpu.matmul %197, %159, %cst_38 {dimension_numbers = #tpu.dot_dimension_numbers<[1], [0], [0], [1], [0, 0, 1, 1], [], []>} : vector<1x32xf32>, vector<32x128xf32>, vector<1x128xf32> -> vector<1x128xf32>
    %200 = arith.addf %198, %199 : vector<1x128xf32>
    %201 = arith.negf %200 : vector<1x128xf32>
    %202 = math.exp %201 : vector<1x128xf32>
    %cst_39 = arith.constant 1.000000e+00 : f32
    %203 = vector.broadcast %cst_39 : f32 to vector<1x128xf32>
    %204 = arith.addf %203, %202 : vector<1x128xf32>
    %205 = arith.divf %203, %204 : vector<1x128xf32>
    %206 = math.tanh %200 : vector<1x128xf32>
    %207 = vector.extract_strided_slice %205 {offsets = [0, 0], sizes = [1, 32], strides = [1, 1]} : vector<1x128xf32> to vector<1x32xf32>
    %208 = vector.extract_strided_slice %205 {offsets = [0, 32], sizes = [1, 32], strides = [1, 1]} : vector<1x128xf32> to vector<1x32xf32>
    %209 = vector.extract_strided_slice %206 {offsets = [0, 64], sizes = [1, 32], strides = [1, 1]} : vector<1x128xf32> to vector<1x32xf32>
    %210 = vector.extract_strided_slice %205 {offsets = [0, 96], sizes = [1, 32], strides = [1, 1]} : vector<1x128xf32> to vector<1x32xf32>
    %211 = arith.mulf %208, %195 : vector<1x32xf32>
    %212 = arith.mulf %207, %209 : vector<1x32xf32>
    %213 = arith.addf %211, %212 : vector<1x32xf32>
    %214 = math.tanh %213 : vector<1x32xf32>
    %215 = arith.mulf %210, %214 : vector<1x32xf32>
    %216 = vector.extract_strided_slice %158 {offsets = [3, 0], sizes = [1, 128], strides = [1, 1]} : vector<8x128xf32> to vector<1x128xf32>
    %cst_40 = arith.constant dense<0.000000e+00> : vector<1x128xf32>
    %217 = tpu.matmul %215, %159, %cst_40 {dimension_numbers = #tpu.dot_dimension_numbers<[1], [0], [0], [1], [0, 0, 1, 1], [], []>} : vector<1x32xf32>, vector<32x128xf32>, vector<1x128xf32> -> vector<1x128xf32>
    %218 = arith.addf %216, %217 : vector<1x128xf32>
    %219 = arith.negf %218 : vector<1x128xf32>
    %220 = math.exp %219 : vector<1x128xf32>
    %cst_41 = arith.constant 1.000000e+00 : f32
    %221 = vector.broadcast %cst_41 : f32 to vector<1x128xf32>
    %222 = arith.addf %221, %220 : vector<1x128xf32>
    %223 = arith.divf %221, %222 : vector<1x128xf32>
    %224 = math.tanh %218 : vector<1x128xf32>
    %225 = vector.extract_strided_slice %223 {offsets = [0, 0], sizes = [1, 32], strides = [1, 1]} : vector<1x128xf32> to vector<1x32xf32>
    %226 = vector.extract_strided_slice %223 {offsets = [0, 32], sizes = [1, 32], strides = [1, 1]} : vector<1x128xf32> to vector<1x32xf32>
    %227 = vector.extract_strided_slice %224 {offsets = [0, 64], sizes = [1, 32], strides = [1, 1]} : vector<1x128xf32> to vector<1x32xf32>
    %228 = vector.extract_strided_slice %223 {offsets = [0, 96], sizes = [1, 32], strides = [1, 1]} : vector<1x128xf32> to vector<1x32xf32>
    %229 = arith.mulf %226, %213 : vector<1x32xf32>
    %230 = arith.mulf %225, %227 : vector<1x32xf32>
    %231 = arith.addf %229, %230 : vector<1x32xf32>
    %232 = math.tanh %231 : vector<1x32xf32>
    %233 = arith.mulf %228, %232 : vector<1x32xf32>
    %234 = vector.extract_strided_slice %158 {offsets = [4, 0], sizes = [1, 128], strides = [1, 1]} : vector<8x128xf32> to vector<1x128xf32>
    %cst_42 = arith.constant dense<0.000000e+00> : vector<1x128xf32>
    %235 = tpu.matmul %233, %159, %cst_42 {dimension_numbers = #tpu.dot_dimension_numbers<[1], [0], [0], [1], [0, 0, 1, 1], [], []>} : vector<1x32xf32>, vector<32x128xf32>, vector<1x128xf32> -> vector<1x128xf32>
    %236 = arith.addf %234, %235 : vector<1x128xf32>
    %237 = arith.negf %236 : vector<1x128xf32>
    %238 = math.exp %237 : vector<1x128xf32>
    %cst_43 = arith.constant 1.000000e+00 : f32
    %239 = vector.broadcast %cst_43 : f32 to vector<1x128xf32>
    %240 = arith.addf %239, %238 : vector<1x128xf32>
    %241 = arith.divf %239, %240 : vector<1x128xf32>
    %242 = math.tanh %236 : vector<1x128xf32>
    %243 = vector.extract_strided_slice %241 {offsets = [0, 0], sizes = [1, 32], strides = [1, 1]} : vector<1x128xf32> to vector<1x32xf32>
    %244 = vector.extract_strided_slice %241 {offsets = [0, 32], sizes = [1, 32], strides = [1, 1]} : vector<1x128xf32> to vector<1x32xf32>
    %245 = vector.extract_strided_slice %242 {offsets = [0, 64], sizes = [1, 32], strides = [1, 1]} : vector<1x128xf32> to vector<1x32xf32>
    %246 = vector.extract_strided_slice %241 {offsets = [0, 96], sizes = [1, 32], strides = [1, 1]} : vector<1x128xf32> to vector<1x32xf32>
    %247 = arith.mulf %244, %231 : vector<1x32xf32>
    %248 = arith.mulf %243, %245 : vector<1x32xf32>
    %249 = arith.addf %247, %248 : vector<1x32xf32>
    %250 = math.tanh %249 : vector<1x32xf32>
    %251 = arith.mulf %246, %250 : vector<1x32xf32>
    %252 = vector.extract_strided_slice %158 {offsets = [5, 0], sizes = [1, 128], strides = [1, 1]} : vector<8x128xf32> to vector<1x128xf32>
    %cst_44 = arith.constant dense<0.000000e+00> : vector<1x128xf32>
    %253 = tpu.matmul %251, %159, %cst_44 {dimension_numbers = #tpu.dot_dimension_numbers<[1], [0], [0], [1], [0, 0, 1, 1], [], []>} : vector<1x32xf32>, vector<32x128xf32>, vector<1x128xf32> -> vector<1x128xf32>
    %254 = arith.addf %252, %253 : vector<1x128xf32>
    %255 = arith.negf %254 : vector<1x128xf32>
    %256 = math.exp %255 : vector<1x128xf32>
    %cst_45 = arith.constant 1.000000e+00 : f32
    %257 = vector.broadcast %cst_45 : f32 to vector<1x128xf32>
    %258 = arith.addf %257, %256 : vector<1x128xf32>
    %259 = arith.divf %257, %258 : vector<1x128xf32>
    %260 = math.tanh %254 : vector<1x128xf32>
    %261 = vector.extract_strided_slice %259 {offsets = [0, 0], sizes = [1, 32], strides = [1, 1]} : vector<1x128xf32> to vector<1x32xf32>
    %262 = vector.extract_strided_slice %259 {offsets = [0, 32], sizes = [1, 32], strides = [1, 1]} : vector<1x128xf32> to vector<1x32xf32>
    %263 = vector.extract_strided_slice %260 {offsets = [0, 64], sizes = [1, 32], strides = [1, 1]} : vector<1x128xf32> to vector<1x32xf32>
    %264 = vector.extract_strided_slice %259 {offsets = [0, 96], sizes = [1, 32], strides = [1, 1]} : vector<1x128xf32> to vector<1x32xf32>
    %265 = arith.mulf %262, %249 : vector<1x32xf32>
    %266 = arith.mulf %261, %263 : vector<1x32xf32>
    %267 = arith.addf %265, %266 : vector<1x32xf32>
    %268 = math.tanh %267 : vector<1x32xf32>
    %269 = arith.mulf %264, %268 : vector<1x32xf32>
    %270 = vector.extract_strided_slice %158 {offsets = [6, 0], sizes = [1, 128], strides = [1, 1]} : vector<8x128xf32> to vector<1x128xf32>
    %cst_46 = arith.constant dense<0.000000e+00> : vector<1x128xf32>
    %271 = tpu.matmul %269, %159, %cst_46 {dimension_numbers = #tpu.dot_dimension_numbers<[1], [0], [0], [1], [0, 0, 1, 1], [], []>} : vector<1x32xf32>, vector<32x128xf32>, vector<1x128xf32> -> vector<1x128xf32>
    %272 = arith.addf %270, %271 : vector<1x128xf32>
    %273 = arith.negf %272 : vector<1x128xf32>
    %274 = math.exp %273 : vector<1x128xf32>
    %cst_47 = arith.constant 1.000000e+00 : f32
    %275 = vector.broadcast %cst_47 : f32 to vector<1x128xf32>
    %276 = arith.addf %275, %274 : vector<1x128xf32>
    %277 = arith.divf %275, %276 : vector<1x128xf32>
    %278 = math.tanh %272 : vector<1x128xf32>
    %279 = vector.extract_strided_slice %277 {offsets = [0, 0], sizes = [1, 32], strides = [1, 1]} : vector<1x128xf32> to vector<1x32xf32>
    %280 = vector.extract_strided_slice %277 {offsets = [0, 32], sizes = [1, 32], strides = [1, 1]} : vector<1x128xf32> to vector<1x32xf32>
    %281 = vector.extract_strided_slice %278 {offsets = [0, 64], sizes = [1, 32], strides = [1, 1]} : vector<1x128xf32> to vector<1x32xf32>
    %282 = vector.extract_strided_slice %277 {offsets = [0, 96], sizes = [1, 32], strides = [1, 1]} : vector<1x128xf32> to vector<1x32xf32>
    %283 = arith.mulf %280, %267 : vector<1x32xf32>
    %284 = arith.mulf %279, %281 : vector<1x32xf32>
    %285 = arith.addf %283, %284 : vector<1x32xf32>
    %286 = math.tanh %285 : vector<1x32xf32>
    %287 = arith.mulf %282, %286 : vector<1x32xf32>
    %288 = vector.extract_strided_slice %158 {offsets = [7, 0], sizes = [1, 128], strides = [1, 1]} : vector<8x128xf32> to vector<1x128xf32>
    %cst_48 = arith.constant dense<0.000000e+00> : vector<1x128xf32>
    %289 = tpu.matmul %287, %159, %cst_48 {dimension_numbers = #tpu.dot_dimension_numbers<[1], [0], [0], [1], [0, 0, 1, 1], [], []>} : vector<1x32xf32>, vector<32x128xf32>, vector<1x128xf32> -> vector<1x128xf32>
    %290 = arith.addf %288, %289 : vector<1x128xf32>
    %291 = arith.negf %290 : vector<1x128xf32>
    %292 = math.exp %291 : vector<1x128xf32>
    %cst_49 = arith.constant 1.000000e+00 : f32
    %293 = vector.broadcast %cst_49 : f32 to vector<1x128xf32>
    %294 = arith.addf %293, %292 : vector<1x128xf32>
    %295 = arith.divf %293, %294 : vector<1x128xf32>
    %296 = math.tanh %290 : vector<1x128xf32>
    %297 = vector.extract_strided_slice %295 {offsets = [0, 0], sizes = [1, 32], strides = [1, 1]} : vector<1x128xf32> to vector<1x32xf32>
    %298 = vector.extract_strided_slice %295 {offsets = [0, 32], sizes = [1, 32], strides = [1, 1]} : vector<1x128xf32> to vector<1x32xf32>
    %299 = vector.extract_strided_slice %296 {offsets = [0, 64], sizes = [1, 32], strides = [1, 1]} : vector<1x128xf32> to vector<1x32xf32>
    %300 = vector.extract_strided_slice %295 {offsets = [0, 96], sizes = [1, 32], strides = [1, 1]} : vector<1x128xf32> to vector<1x32xf32>
    %301 = arith.mulf %298, %285 : vector<1x32xf32>
    %302 = arith.mulf %297, %299 : vector<1x32xf32>
    %303 = arith.addf %301, %302 : vector<1x32xf32>
    %304 = math.tanh %303 : vector<1x32xf32>
    %305 = arith.mulf %300, %304 : vector<1x32xf32>
    %306 = tpu.concatenate %179, %197, %215, %233, %251, %269, %287, %305 in 0 : vector<1x32xf32>, vector<1x32xf32>, vector<1x32xf32>, vector<1x32xf32>, vector<1x32xf32>, vector<1x32xf32>, vector<1x32xf32>, vector<1x32xf32> -> vector<8x32xf32>
    %c0_50 = arith.constant 0 : index
    %c0_51 = arith.constant 0 : index
    %307 = vector.load %arg7[%c0_50, %c0_51] : memref<32x128xf32, #tpu.memory_space<vmem>>, vector<32x128xf32>
    %cst_52 = arith.constant dense<0.000000e+00> : vector<8x128xf32>
    %308 = tpu.matmul %306, %307, %cst_52 {dimension_numbers = #tpu.dot_dimension_numbers<[1], [0], [0], [1], [0, 0, 1, 1], [], []>} : vector<8x32xf32>, vector<32x128xf32>, vector<8x128xf32> -> vector<8x128xf32>
    %c0_53 = arith.constant 0 : index
    %c0_54 = arith.constant 0 : index
    %309 = vector.load %arg9[%c0_53, %c0_54] : memref<1x128xf32, #tpu.memory_space<vmem>>, vector<1x128xf32>
    %310 = vector.broadcast %309 : vector<1x128xf32> to vector<8x128xf32>
    %311 = arith.addf %308, %310 : vector<8x128xf32>
    %c0_55 = arith.constant 0 : index
    %c0_56 = arith.constant 0 : index
    %312 = vector.load %arg8[%c0_55, %c0_56] : memref<32x128xf32, #tpu.memory_space<vmem>>, vector<32x128xf32>
    %cst_57 = arith.constant 0.000000e+00 : f32
    %313 = vector.broadcast %cst_57 : f32 to vector<1x32xf32>
    %cst_58 = arith.constant 0.000000e+00 : f32
    %314 = vector.broadcast %cst_58 : f32 to vector<1x32xf32>
    %315 = vector.extract_strided_slice %311 {offsets = [0, 0], sizes = [1, 128], strides = [1, 1]} : vector<8x128xf32> to vector<1x128xf32>
    %cst_59 = arith.constant dense<0.000000e+00> : vector<1x128xf32>
    %316 = tpu.matmul %313, %312, %cst_59 {dimension_numbers = #tpu.dot_dimension_numbers<[1], [0], [0], [1], [0, 0, 1, 1], [], []>} : vector<1x32xf32>, vector<32x128xf32>, vector<1x128xf32> -> vector<1x128xf32>
    %317 = arith.addf %315, %316 : vector<1x128xf32>
    %318 = arith.negf %317 : vector<1x128xf32>
    %319 = math.exp %318 : vector<1x128xf32>
    %cst_60 = arith.constant 1.000000e+00 : f32
    %320 = vector.broadcast %cst_60 : f32 to vector<1x128xf32>
    %321 = arith.addf %320, %319 : vector<1x128xf32>
    %322 = arith.divf %320, %321 : vector<1x128xf32>
    %323 = math.tanh %317 : vector<1x128xf32>
    %324 = vector.extract_strided_slice %322 {offsets = [0, 0], sizes = [1, 32], strides = [1, 1]} : vector<1x128xf32> to vector<1x32xf32>
    %325 = vector.extract_strided_slice %322 {offsets = [0, 32], sizes = [1, 32], strides = [1, 1]} : vector<1x128xf32> to vector<1x32xf32>
    %326 = vector.extract_strided_slice %323 {offsets = [0, 64], sizes = [1, 32], strides = [1, 1]} : vector<1x128xf32> to vector<1x32xf32>
    %327 = vector.extract_strided_slice %322 {offsets = [0, 96], sizes = [1, 32], strides = [1, 1]} : vector<1x128xf32> to vector<1x32xf32>
    %328 = arith.mulf %325, %314 : vector<1x32xf32>
    %329 = arith.mulf %324, %326 : vector<1x32xf32>
    %330 = arith.addf %328, %329 : vector<1x32xf32>
    %331 = math.tanh %330 : vector<1x32xf32>
    %332 = arith.mulf %327, %331 : vector<1x32xf32>
    %333 = vector.extract_strided_slice %311 {offsets = [1, 0], sizes = [1, 128], strides = [1, 1]} : vector<8x128xf32> to vector<1x128xf32>
    %cst_61 = arith.constant dense<0.000000e+00> : vector<1x128xf32>
    %334 = tpu.matmul %332, %312, %cst_61 {dimension_numbers = #tpu.dot_dimension_numbers<[1], [0], [0], [1], [0, 0, 1, 1], [], []>} : vector<1x32xf32>, vector<32x128xf32>, vector<1x128xf32> -> vector<1x128xf32>
    %335 = arith.addf %333, %334 : vector<1x128xf32>
    %336 = arith.negf %335 : vector<1x128xf32>
    %337 = math.exp %336 : vector<1x128xf32>
    %cst_62 = arith.constant 1.000000e+00 : f32
    %338 = vector.broadcast %cst_62 : f32 to vector<1x128xf32>
    %339 = arith.addf %338, %337 : vector<1x128xf32>
    %340 = arith.divf %338, %339 : vector<1x128xf32>
    %341 = math.tanh %335 : vector<1x128xf32>
    %342 = vector.extract_strided_slice %340 {offsets = [0, 0], sizes = [1, 32], strides = [1, 1]} : vector<1x128xf32> to vector<1x32xf32>
    %343 = vector.extract_strided_slice %340 {offsets = [0, 32], sizes = [1, 32], strides = [1, 1]} : vector<1x128xf32> to vector<1x32xf32>
    %344 = vector.extract_strided_slice %341 {offsets = [0, 64], sizes = [1, 32], strides = [1, 1]} : vector<1x128xf32> to vector<1x32xf32>
    %345 = vector.extract_strided_slice %340 {offsets = [0, 96], sizes = [1, 32], strides = [1, 1]} : vector<1x128xf32> to vector<1x32xf32>
    %346 = arith.mulf %343, %330 : vector<1x32xf32>
    %347 = arith.mulf %342, %344 : vector<1x32xf32>
    %348 = arith.addf %346, %347 : vector<1x32xf32>
    %349 = math.tanh %348 : vector<1x32xf32>
    %350 = arith.mulf %345, %349 : vector<1x32xf32>
    %351 = vector.extract_strided_slice %311 {offsets = [2, 0], sizes = [1, 128], strides = [1, 1]} : vector<8x128xf32> to vector<1x128xf32>
    %cst_63 = arith.constant dense<0.000000e+00> : vector<1x128xf32>
    %352 = tpu.matmul %350, %312, %cst_63 {dimension_numbers = #tpu.dot_dimension_numbers<[1], [0], [0], [1], [0, 0, 1, 1], [], []>} : vector<1x32xf32>, vector<32x128xf32>, vector<1x128xf32> -> vector<1x128xf32>
    %353 = arith.addf %351, %352 : vector<1x128xf32>
    %354 = arith.negf %353 : vector<1x128xf32>
    %355 = math.exp %354 : vector<1x128xf32>
    %cst_64 = arith.constant 1.000000e+00 : f32
    %356 = vector.broadcast %cst_64 : f32 to vector<1x128xf32>
    %357 = arith.addf %356, %355 : vector<1x128xf32>
    %358 = arith.divf %356, %357 : vector<1x128xf32>
    %359 = math.tanh %353 : vector<1x128xf32>
    %360 = vector.extract_strided_slice %358 {offsets = [0, 0], sizes = [1, 32], strides = [1, 1]} : vector<1x128xf32> to vector<1x32xf32>
    %361 = vector.extract_strided_slice %358 {offsets = [0, 32], sizes = [1, 32], strides = [1, 1]} : vector<1x128xf32> to vector<1x32xf32>
    %362 = vector.extract_strided_slice %359 {offsets = [0, 64], sizes = [1, 32], strides = [1, 1]} : vector<1x128xf32> to vector<1x32xf32>
    %363 = vector.extract_strided_slice %358 {offsets = [0, 96], sizes = [1, 32], strides = [1, 1]} : vector<1x128xf32> to vector<1x32xf32>
    %364 = arith.mulf %361, %348 : vector<1x32xf32>
    %365 = arith.mulf %360, %362 : vector<1x32xf32>
    %366 = arith.addf %364, %365 : vector<1x32xf32>
    %367 = math.tanh %366 : vector<1x32xf32>
    %368 = arith.mulf %363, %367 : vector<1x32xf32>
    %369 = vector.extract_strided_slice %311 {offsets = [3, 0], sizes = [1, 128], strides = [1, 1]} : vector<8x128xf32> to vector<1x128xf32>
    %cst_65 = arith.constant dense<0.000000e+00> : vector<1x128xf32>
    %370 = tpu.matmul %368, %312, %cst_65 {dimension_numbers = #tpu.dot_dimension_numbers<[1], [0], [0], [1], [0, 0, 1, 1], [], []>} : vector<1x32xf32>, vector<32x128xf32>, vector<1x128xf32> -> vector<1x128xf32>
    %371 = arith.addf %369, %370 : vector<1x128xf32>
    %372 = arith.negf %371 : vector<1x128xf32>
    %373 = math.exp %372 : vector<1x128xf32>
    %cst_66 = arith.constant 1.000000e+00 : f32
    %374 = vector.broadcast %cst_66 : f32 to vector<1x128xf32>
    %375 = arith.addf %374, %373 : vector<1x128xf32>
    %376 = arith.divf %374, %375 : vector<1x128xf32>
    %377 = math.tanh %371 : vector<1x128xf32>
    %378 = vector.extract_strided_slice %376 {offsets = [0, 0], sizes = [1, 32], strides = [1, 1]} : vector<1x128xf32> to vector<1x32xf32>
    %379 = vector.extract_strided_slice %376 {offsets = [0, 32], sizes = [1, 32], strides = [1, 1]} : vector<1x128xf32> to vector<1x32xf32>
    %380 = vector.extract_strided_slice %377 {offsets = [0, 64], sizes = [1, 32], strides = [1, 1]} : vector<1x128xf32> to vector<1x32xf32>
    %381 = vector.extract_strided_slice %376 {offsets = [0, 96], sizes = [1, 32], strides = [1, 1]} : vector<1x128xf32> to vector<1x32xf32>
    %382 = arith.mulf %379, %366 : vector<1x32xf32>
    %383 = arith.mulf %378, %380 : vector<1x32xf32>
    %384 = arith.addf %382, %383 : vector<1x32xf32>
    %385 = math.tanh %384 : vector<1x32xf32>
    %386 = arith.mulf %381, %385 : vector<1x32xf32>
    %387 = vector.extract_strided_slice %311 {offsets = [4, 0], sizes = [1, 128], strides = [1, 1]} : vector<8x128xf32> to vector<1x128xf32>
    %cst_67 = arith.constant dense<0.000000e+00> : vector<1x128xf32>
    %388 = tpu.matmul %386, %312, %cst_67 {dimension_numbers = #tpu.dot_dimension_numbers<[1], [0], [0], [1], [0, 0, 1, 1], [], []>} : vector<1x32xf32>, vector<32x128xf32>, vector<1x128xf32> -> vector<1x128xf32>
    %389 = arith.addf %387, %388 : vector<1x128xf32>
    %390 = arith.negf %389 : vector<1x128xf32>
    %391 = math.exp %390 : vector<1x128xf32>
    %cst_68 = arith.constant 1.000000e+00 : f32
    %392 = vector.broadcast %cst_68 : f32 to vector<1x128xf32>
    %393 = arith.addf %392, %391 : vector<1x128xf32>
    %394 = arith.divf %392, %393 : vector<1x128xf32>
    %395 = math.tanh %389 : vector<1x128xf32>
    %396 = vector.extract_strided_slice %394 {offsets = [0, 0], sizes = [1, 32], strides = [1, 1]} : vector<1x128xf32> to vector<1x32xf32>
    %397 = vector.extract_strided_slice %394 {offsets = [0, 32], sizes = [1, 32], strides = [1, 1]} : vector<1x128xf32> to vector<1x32xf32>
    %398 = vector.extract_strided_slice %395 {offsets = [0, 64], sizes = [1, 32], strides = [1, 1]} : vector<1x128xf32> to vector<1x32xf32>
    %399 = vector.extract_strided_slice %394 {offsets = [0, 96], sizes = [1, 32], strides = [1, 1]} : vector<1x128xf32> to vector<1x32xf32>
    %400 = arith.mulf %397, %384 : vector<1x32xf32>
    %401 = arith.mulf %396, %398 : vector<1x32xf32>
    %402 = arith.addf %400, %401 : vector<1x32xf32>
    %403 = math.tanh %402 : vector<1x32xf32>
    %404 = arith.mulf %399, %403 : vector<1x32xf32>
    %405 = vector.extract_strided_slice %311 {offsets = [5, 0], sizes = [1, 128], strides = [1, 1]} : vector<8x128xf32> to vector<1x128xf32>
    %cst_69 = arith.constant dense<0.000000e+00> : vector<1x128xf32>
    %406 = tpu.matmul %404, %312, %cst_69 {dimension_numbers = #tpu.dot_dimension_numbers<[1], [0], [0], [1], [0, 0, 1, 1], [], []>} : vector<1x32xf32>, vector<32x128xf32>, vector<1x128xf32> -> vector<1x128xf32>
    %407 = arith.addf %405, %406 : vector<1x128xf32>
    %408 = arith.negf %407 : vector<1x128xf32>
    %409 = math.exp %408 : vector<1x128xf32>
    %cst_70 = arith.constant 1.000000e+00 : f32
    %410 = vector.broadcast %cst_70 : f32 to vector<1x128xf32>
    %411 = arith.addf %410, %409 : vector<1x128xf32>
    %412 = arith.divf %410, %411 : vector<1x128xf32>
    %413 = math.tanh %407 : vector<1x128xf32>
    %414 = vector.extract_strided_slice %412 {offsets = [0, 0], sizes = [1, 32], strides = [1, 1]} : vector<1x128xf32> to vector<1x32xf32>
    %415 = vector.extract_strided_slice %412 {offsets = [0, 32], sizes = [1, 32], strides = [1, 1]} : vector<1x128xf32> to vector<1x32xf32>
    %416 = vector.extract_strided_slice %413 {offsets = [0, 64], sizes = [1, 32], strides = [1, 1]} : vector<1x128xf32> to vector<1x32xf32>
    %417 = vector.extract_strided_slice %412 {offsets = [0, 96], sizes = [1, 32], strides = [1, 1]} : vector<1x128xf32> to vector<1x32xf32>
    %418 = arith.mulf %415, %402 : vector<1x32xf32>
    %419 = arith.mulf %414, %416 : vector<1x32xf32>
    %420 = arith.addf %418, %419 : vector<1x32xf32>
    %421 = math.tanh %420 : vector<1x32xf32>
    %422 = arith.mulf %417, %421 : vector<1x32xf32>
    %423 = vector.extract_strided_slice %311 {offsets = [6, 0], sizes = [1, 128], strides = [1, 1]} : vector<8x128xf32> to vector<1x128xf32>
    %cst_71 = arith.constant dense<0.000000e+00> : vector<1x128xf32>
    %424 = tpu.matmul %422, %312, %cst_71 {dimension_numbers = #tpu.dot_dimension_numbers<[1], [0], [0], [1], [0, 0, 1, 1], [], []>} : vector<1x32xf32>, vector<32x128xf32>, vector<1x128xf32> -> vector<1x128xf32>
    %425 = arith.addf %423, %424 : vector<1x128xf32>
    %426 = arith.negf %425 : vector<1x128xf32>
    %427 = math.exp %426 : vector<1x128xf32>
    %cst_72 = arith.constant 1.000000e+00 : f32
    %428 = vector.broadcast %cst_72 : f32 to vector<1x128xf32>
    %429 = arith.addf %428, %427 : vector<1x128xf32>
    %430 = arith.divf %428, %429 : vector<1x128xf32>
    %431 = math.tanh %425 : vector<1x128xf32>
    %432 = vector.extract_strided_slice %430 {offsets = [0, 0], sizes = [1, 32], strides = [1, 1]} : vector<1x128xf32> to vector<1x32xf32>
    %433 = vector.extract_strided_slice %430 {offsets = [0, 32], sizes = [1, 32], strides = [1, 1]} : vector<1x128xf32> to vector<1x32xf32>
    %434 = vector.extract_strided_slice %431 {offsets = [0, 64], sizes = [1, 32], strides = [1, 1]} : vector<1x128xf32> to vector<1x32xf32>
    %435 = vector.extract_strided_slice %430 {offsets = [0, 96], sizes = [1, 32], strides = [1, 1]} : vector<1x128xf32> to vector<1x32xf32>
    %436 = arith.mulf %433, %420 : vector<1x32xf32>
    %437 = arith.mulf %432, %434 : vector<1x32xf32>
    %438 = arith.addf %436, %437 : vector<1x32xf32>
    %439 = math.tanh %438 : vector<1x32xf32>
    %440 = arith.mulf %435, %439 : vector<1x32xf32>
    %441 = vector.extract_strided_slice %311 {offsets = [7, 0], sizes = [1, 128], strides = [1, 1]} : vector<8x128xf32> to vector<1x128xf32>
    %cst_73 = arith.constant dense<0.000000e+00> : vector<1x128xf32>
    %442 = tpu.matmul %440, %312, %cst_73 {dimension_numbers = #tpu.dot_dimension_numbers<[1], [0], [0], [1], [0, 0, 1, 1], [], []>} : vector<1x32xf32>, vector<32x128xf32>, vector<1x128xf32> -> vector<1x128xf32>
    %443 = arith.addf %441, %442 : vector<1x128xf32>
    %444 = arith.negf %443 : vector<1x128xf32>
    %445 = math.exp %444 : vector<1x128xf32>
    %cst_74 = arith.constant 1.000000e+00 : f32
    %446 = vector.broadcast %cst_74 : f32 to vector<1x128xf32>
    %447 = arith.addf %446, %445 : vector<1x128xf32>
    %448 = arith.divf %446, %447 : vector<1x128xf32>
    %449 = math.tanh %443 : vector<1x128xf32>
    %450 = vector.extract_strided_slice %448 {offsets = [0, 0], sizes = [1, 32], strides = [1, 1]} : vector<1x128xf32> to vector<1x32xf32>
    %451 = vector.extract_strided_slice %448 {offsets = [0, 32], sizes = [1, 32], strides = [1, 1]} : vector<1x128xf32> to vector<1x32xf32>
    %452 = vector.extract_strided_slice %449 {offsets = [0, 64], sizes = [1, 32], strides = [1, 1]} : vector<1x128xf32> to vector<1x32xf32>
    %453 = vector.extract_strided_slice %448 {offsets = [0, 96], sizes = [1, 32], strides = [1, 1]} : vector<1x128xf32> to vector<1x32xf32>
    %454 = arith.mulf %451, %438 : vector<1x32xf32>
    %455 = arith.mulf %450, %452 : vector<1x32xf32>
    %456 = arith.addf %454, %455 : vector<1x32xf32>
    %457 = math.tanh %456 : vector<1x32xf32>
    %458 = arith.mulf %453, %457 : vector<1x32xf32>
    %459 = tpu.concatenate %152, %305, %458 in 0 : vector<1x32xf32>, vector<1x32xf32>, vector<1x32xf32> -> vector<3x32xf32>
    %c0_75 = arith.constant 0 : index
    %c0_76 = arith.constant 0 : index
    %460 = vector.load %arg10[%c0_75, %c0_76] : memref<3x32xf32, #tpu.memory_space<vmem>>, vector<3x32xf32>
    tpu.vector_store %arg10[%c0_75, %c0_76], %459 {strides = array<i32>} : memref<3x32xf32, #tpu.memory_space<vmem>>, vector<3x32xf32>,
    %461 = tpu.concatenate %150, %303, %456 in 0 : vector<1x32xf32>, vector<1x32xf32>, vector<1x32xf32> -> vector<3x32xf32>
    %c0_77 = arith.constant 0 : index
    %c0_78 = arith.constant 0 : index
    %462 = vector.load %arg11[%c0_77, %c0_78] : memref<3x32xf32, #tpu.memory_space<vmem>>, vector<3x32xf32>
    tpu.vector_store %arg11[%c0_77, %c0_78], %461 {strides = array<i32>} : memref<3x32xf32, #tpu.memory_space<vmem>>, vector<3x32xf32>,
    return
  }
}

</mosaic_0001>

<bundles_post_ra>
// kernel: tpu_custom_call.1
= control target key start
LH: loop header
LB: loop body
LE: loop exit
PB: predicated region body
PF: predicated region fallthrough
CT: control target
= control target key end

     0   :  { %17 = vsyncpa [#allocation3], 0  ;;  %s4431_s0 = inlined_call_operand.vmem [shape: f32[8,4], index: 0, kind: input, shape index: {}]   ;;  %s4432_s1 = inlined_call_operand.vmem [shape: f32[4,128], index: 1, kind: input, shape index: {}]   ;;  %s4433_s2 = inlined_call_operand.hbm [shape: f32[32,128], index: 2, kind: input, shape index: {}]   ;;  %s4434_s3 = inlined_call_operand.vmem [shape: f32[1,128], index: 3, kind: input, shape index: {}]   ;;  %s4435_s4 = inlined_call_operand.hbm [shape: f32[32,128], index: 4, kind: input, shape index: {}]   ;;  %s4436_s5 = inlined_call_operand.hbm [shape: f32[32,128], index: 5, kind: input, shape index: {}]   ;;  %s4437_s6 = inlined_call_operand.vmem [shape: f32[1,128], index: 6, kind: input, shape index: {}]   ;;  %s4438_s7 = inlined_call_operand.hbm [shape: f32[32,128], index: 7, kind: input, shape index: {}]   ;;  %s4439_s8 = inlined_call_operand.hbm [shape: f32[32,128], index: 8, kind: input, shape index: {}]   ;;  %s4440_s9 = inlined_call_operand.vmem [shape: f32[1,128], index: 9, kind: input, shape index: {}]   ;;  %s4441_s10 = inlined_call_operand.hbm [shape: f32[3,32], index: 10, kind: output, shape index: {0}]   ;;  %s4442_s11 = inlined_call_operand.hbm [shape: f32[3,32], index: 11, kind: output, shape index: {1}]  }
   0x1   :  { %18 = vsyncpa [#allocation6], 0 }
   0x2   :  { %19 = vsyncpa [#allocation9], 0 }
   0x3   :  { %20 = vsyncpa [#allocation4], 0 }
   0x4   :  { %21 = vsyncpa [#allocation13], 0  ;;  %s3826_s17 = smov [#allocation5]   ;;  %s3827_s19 = smov [#allocation8]  }
   0x5   :  { %s45_s18 = sshll.u32 %s3826_s17, 4  ;;  %s71_s20 = sshll.u32 %s3827_s19, 4  ;;  %s46_s18 = int_to_ptr.vmem [resolvable:$true] %s45_s18  ;;  %s72_s20 = int_to_ptr.vmem [resolvable:$true] %s71_s20 }
   0x6   :  { %s3684_s21 = scalar_lea.vmem %s46_s18, 512  ;;  %p3689_p1 = scmp.lt.s32.totalorder %s46_s18, %s46_s18 }
   0x7   :  { %p3685_p0 = scmp.ne.s32.totalorder %s46_s18, %s3684_s21  ;;  %p3690_p2 = scmp.lt.s32.totalorder %s3684_s21, %s3684_s21 }
   0x9   :  { %p3691_p3 = por %p3690_p2, %p3689_p1 }
   0xb   :  { %p3692_p4 = pnand %p3691_p3, %p3685_p0 }
   0xd   :  { %3695 = shalt.err (!%p3692_p4)
}
   0xe   :  { %s3828_s22 = smov 128   ;;  %s3829_s23 = smov 8  }
   0xf   :  { %51 = dma.hbm_to_vmem [thread:$0]  %s4435_s4, 512, %s46_s18, [#allocation6], %s3828_s22, %s3828_s22, %s3829_s23  }
  0x10   :  { %s3704_s26 = scalar_lea.vmem %s72_s20, 512  ;;  %p3709_p6 = scmp.lt.s32.totalorder %s72_s20, %s72_s20 }
  0x11   :  { %p3705_p5 = scmp.ne.s32.totalorder %s72_s20, %s3704_s26  ;;  %p3710_p7 = scmp.lt.s32.totalorder %s3704_s26, %s3704_s26 }
  0x13   :  { %p3711_p8 = por %p3710_p7, %p3709_p6 }
  0x15   :  { %p3712_p9 = pnand %p3711_p8, %p3705_p5 }
  0x17   :  { %3715 = shalt.err (!%p3712_p9)
}
  0x18   :  { %77 = dma.hbm_to_vmem [thread:$0]  %s4438_s7, 512, %s72_s20, [#allocation9], %s3828_s22, %s3828_s22, %s3829_s23  }
  0x19   :  { %s3830_s29 = smov [#allocation2]   ;;  %s3831_s12 = smov [#allocation7]  }
  0x1a   :  { %s31_s30 = sshll.u32 %s3830_s29, 4  ;;  %s57_s13 = sshll.u32 %s3831_s12, 4  ;;  %s32_s30 = int_to_ptr.vmem [resolvable:$true] %s31_s30  ;;  %s58_s13 = int_to_ptr.vmem [resolvable:$true] %s57_s13 }
  0x1b   :  { %s3724_s4 = scalar_lea.vmem %s32_s30, 512  ;;  %p3729_p11 = scmp.lt.s32.totalorder %s32_s30, %s32_s30 }
  0x1c   :  { %p3725_p10 = scmp.ne.s32.totalorder %s32_s30, %s3724_s4  ;;  %p3730_p12 = scmp.lt.s32.totalorder %s3724_s4, %s3724_s4 }
  0x1e   :  { %p3731_p13 = por %p3730_p12, %p3729_p11 }
  0x20   :  { %p3732_p0 = pnand %p3731_p13, %p3725_p10 }
  0x22   :  { %3735 = shalt.err (!%p3732_p0)
}
  0x23   :  { %37 = dma.hbm_to_vmem [thread:$0]  %s4433_s2, 512, %s32_s30, [#allocation3], %s3828_s22, %s3828_s22, %s3829_s23  }
  0x24   :  { %s3744_s7 = scalar_lea.vmem %s58_s13, 512  ;;  %p3749_p2 = scmp.lt.s32.totalorder %s58_s13, %s58_s13 }
  0x25   :  { %p3745_p1 = scmp.ne.s32.totalorder %s58_s13, %s3744_s7  ;;  %p3750_p3 = scmp.lt.s32.totalorder %s3744_s7, %s3744_s7 }
  0x27   :  { %p3751_p4 = por %p3750_p3, %p3749_p2 }
  0x29   :  { %p3752_p5 = pnand %p3751_p4, %p3745_p1 }
  0x2b   :  { %3755 = shalt.err (!%p3752_p5)
}
  0x2c   :  { %63 = dma.hbm_to_vmem [thread:$0]  %s4436_s5, 512, %s58_s13, [#allocation6], %s3828_s22, %s3828_s22, %s3829_s23  }
  0x2d   :  { %s3832_s18 = smov [#allocation10]  }
  0x2e   :  { %s83_s19 = sshll.u32 %s3832_s18, 4  ;;  %s84_s19 = int_to_ptr.vmem [resolvable:$true] %s83_s19 }
  0x2f   :  { %s3764_s20 = scalar_lea.vmem %s84_s19, 512  ;;  %p3769_p7 = scmp.lt.s32.totalorder %s84_s19, %s84_s19 }
  0x30   :  { %p3765_p6 = scmp.ne.s32.totalorder %s84_s19, %s3764_s20  ;;  %p3770_p8 = scmp.lt.s32.totalorder %s3764_s20, %s3764_s20 }
  0x32   :  { %p3771_p9 = por %p3770_p8, %p3769_p7 }
  0x34   :  { %p3772_p10 = pnand %p3771_p9, %p3765_p6 }
  0x36   :  { %3775 = shalt.err (!%p3772_p10)
}
  0x37   :  { %89 = dma.hbm_to_vmem [thread:$0]  %s4439_s8, 512, %s84_s19, [#allocation9], %s3828_s22, %s3828_s22, %s3829_s23  }
  0x38   :  { %3816 = dma.done.wait [#allocation3], 512  }
  0x39   :  { %3817 = vsyncadd [#allocation3], 4294966784 }
  0x3a   :  { %3818 = dma.done.wait [#allocation6], 1024  }
  0x3b   :  { %3819 = vsyncadd [#allocation6], 4294966272 }
  0x3c   :  { %3820 = dma.done.wait [#allocation9], 1024  }
  0x3d   :  { %3821 = vsyncadd [#allocation9], 4294966272  ;;  %v3833_v0 = vmov 0.0   ;;  %vm3834_vm0 = vmmov 0   ;;  %vm120_vm1 = vcmask 1043456   ;;  %vm116_vm2 = vcmask 31744  }
  0x3e   :  { %3184 = vmatprep.subr.mxu1 %v3833_v0  ;;  %3179 = vmatprep.subr.mxu0 %v3833_v0  ;;  %v3936_v1 = vld [vmem:[#allocation2 + $0x18] sm:$0xff]  ;;  %v108_v2 = vld [vmem:[%s4432_s1] sm:$0xf]  ;;  %v3941_v3 = vld [vmem:[#allocation2 + $0x10] sm:$0xff]  ;;  %s3835_s24 = smov 64   ;;  %vm198_vm3 = vcmask 261120  }
  0x3f   :  { %3181 = vmatprep.mubr.msk.f32.mxu0 %vm3834_vm0, %v3833_v0  ;;  %3192 = vmatprep.mubr.msk.f32.mxu1 %vm3834_vm0, %v3833_v0  ;;  %v107_v4 = vld [vmem:[%s4431_s0] sm:$0xff]  ;;  %v3949_v5 = vld [vmem:[#allocation2 + $0x8] sm:$0xff]  ;;  %vm1045_vm4 = vcmask 1040384   ;;  %vm1047_vm5 = vcmask 1041408   ;;  %vm1049_vm6 = vcmask 1042432   ;;  %vm1052_vm7 = vcmask 1044480  }
  0x40   :  { %3185 = vmatpush3.msra.mxu1 %v3936_v1  ;;  %3180 = vmatpush3.msk.msra.mxu0 %vm120_vm1, %v108_v2  ;;  %v3954_v6 = vld [vmem:[#allocation2] sm:$0xff]  ;;  %vm1054_vm8 = vcmask 1045504   ;;  %vm1056_vm9 = vcmask 1046528   ;;  %s3838_s28 = smov [#allocation12]   ;;  %vm2946_vm10 = vcmask 256000  }
  0x41   :  { %3186 = vmatprep.subr.mxu1 %v3833_v0  ;;  %3182 = vmatmul.mubr.msk.f32.vlgmr.msra.gmra.mxu0 %vm116_vm2, %v107_v4  ;;  %v2995_v7 = vld [vmem:[%s4434_s3] ss:$0 sm:$0xff]  ;;  %s3836_s3 = smov 32   ;;  %s2980_s29 = sshll.u32 %s3838_s28, 4  ;;  %s2981_s29 = int_to_ptr.vmem [resolvable:$true] %s2980_s29 }
  0x42   :  { %3187 = vmatpush3.msra.mxu1 %v3941_v3  ;;  %3195 = vmatprep.subr.mxu0 %v3833_v0  ;;  %s3776_s30 = scalar_lea.vmem %s2981_s29, 64  ;;  %p3781_p12 = scmp.lt.s32.totalorder %s2981_s29, %s2981_s29 }
  0x43   :  { %3188 = vmatprep.subr.mxu1 %v3833_v0  ;;  %3196 = vmatpush3.msra.mxu0 %v3936_v1  ;;  %p3777_p11 = scmp.ne.s32.totalorder %s2981_s29, %s3776_s30  ;;  %p3782_p13 = scmp.lt.s32.totalorder %s3776_s30, %s3776_s30 }
  0x44   :  { %3189 = vmatpush3.msra.mxu1 %v3949_v5  ;;  %3197 = vmatprep.subr.mxu0 %v3833_v0 }
  0x45   :  { %3190 = vmatprep.subr.mxu1 %v3833_v0  ;;  %3198 = vmatpush3.msra.mxu0 %v3941_v3  ;;  %p3783_p0 = por %p3782_p13, %p3781_p12 }
  0x46   :  { %3191 = vmatpush3.msra.mxu1 %v3954_v6  ;;  %3199 = vmatprep.subr.mxu0 %v3833_v0 }
  0x47   :  { %3193 = vmatmul.mubr.f32.vlgmr.msra.gmra.mxu1 %v3833_v0  ;;  %3200 = vmatpush3.msra.mxu0 %v3949_v5  ;;  %p3784_p1 = pnand %p3783_p0, %p3777_p11 }
  0x48   :  { %3201 = vmatprep.subr.mxu0 %v3833_v0  ;;  %3203 = vmatprep.mubr.msk.f32.mxu0 %vm3834_vm0, %v3833_v0 }
  0x49   :  { %3202 = vmatpush3.msra.mxu0 %v3954_v6  ;;  %3206 = vmatprep.subr.mxu1 %v3833_v0 }
  0x4a   :  { %3207 = vmatpush3.msra.mxu1 %v3936_v1  ;;  %3214 = vmatprep.mubr.msk.f32.mxu1 %vm3834_vm0, %v3833_v0 }
  0x4b   :  { %3208 = vmatprep.subr.mxu1 %v3833_v0  ;;  %3217 = vmatprep.subr.mxu0 %v3833_v0 }
  0x4c   :  { %3209 = vmatpush3.msra.mxu1 %v3941_v3 }
  0x4d   :  { %3210 = vmatprep.subr.mxu1 %v3833_v0 }
  0x4e   :  { %3211 = vmatpush3.msra.mxu1 %v3949_v5 }
  0x4f   :  { %3212 = vmatprep.subr.mxu1 %v3833_v0 }
  0x50   :  { %3213 = vmatpush3.msra.mxu1 %v3954_v6 }
  0x51   :  { %3228 = vmatprep.subr.mxu1 %v3833_v0 }
 0x101   :  { %v190_v8 = vpop.f32.mrf.mxu0 }
 0x102   :  { %v3984_v10 = vadd.f32 %v2995_v7, %v190_v8 }
 0x103   :  { %v3183_v9 = vpop.f32.mrf.mxu0 }
 0x107   :  { %v268_v11 = vpop.f32.mrf.mxu1 }
 0x108   :  { %v272_v12 = vadd.f32 %v268_v11, %v3984_v10 }
 0x109   :  { %v3194_v13 = vpop.f32.mrf.mxu1 }
 0x10a   :  { %3484 = vtanh.f32 %v272_v12  ;;  %v2998_v15 = vmul.f32 -1.442695, %v272_v12 }
 0x10c   :  { %3486 = vpow2.f32 %v2998_v15 }
 0x117   :  { %v3485_v14 = vpop.eup %3484 }
 0x118   :  { %282 = vrot.lane.b32.xlu0 %v3485_v14, %s3835_s24 }
 0x119   :  { %v3487_v16 = vpop.eup %3486 }
 0x11a   :  { %v276_v17 = vadd.f32 1.0, %v3487_v16 }
 0x11c   :  { %3488 = vrcp.f32 %v276_v17 }
 0x129   :  { %v3489_v18 = vpop.eup %3488 }
 0x12a   :  { %v280_v21 = vmul.f32 0.0, %v3489_v18 }
 0x18a   :  { %v283_v19 = vpop.permute.xlu0 %282 }
 0x18b   :  { %v285_v20 = vmul.f32 %v3489_v18, %v283_v19 }
 0x18d   :  { %287 = vrot.lane.b32.xlu0 %v285_v20, %s3836_s3 }
 0x1ff   :  { %v288_v22 = vpop.permute.xlu0 %287 }
 0x200   :  { %v290_v23 = vadd.f32 %v288_v22, %v280_v21 }
 0x202   :  { %3490 = vtanh.f32 %v290_v23  ;;  %v384_v39 = vrot.slane %v290_v23, 7 }
 0x20f   :  { %v3491_v24 = vpop.eup %3490 }
 0x210   :  { %293 = vrot.lane.b32.xlu1 %v3491_v24, %s3835_s24 }
 0x282   :  { %v294_v25 = vpop.permute.xlu1 %293 }
 0x283   :  { %v3990_v26 = vmul.f32 %v3489_v18, %v294_v25 }
 0x285   :  { %298 = vrot.lane.b32.xlu1 %v3990_v26, %s3836_s3 }
 0x2f7   :  { %v299_v27 = vpop.permute.xlu1 %298 }
 0x2f8   :  { %3204 = vmatmul.mubr.msk.f32.vlgmr.msra.gmra.mxu0 %vm198_vm3, %v299_v27 }
 0x2f9   :  { %3218 = vmatpush3.msra.mxu0 %v3936_v1  ;;  %3225 = vmatprep.mubr.msk.f32.mxu0 %vm3834_vm0, %v3833_v0 }
 0x2fa   :  { %3219 = vmatprep.subr.mxu0 %v3833_v0 }
 0x2fb   :  { %3220 = vmatpush3.msra.mxu0 %v3941_v3 }
 0x2fc   :  { %3221 = vmatprep.subr.mxu0 %v3833_v0 }
 0x2fd   :  { %3222 = vmatpush3.msra.mxu0 %v3949_v5 }
 0x2fe   :  { %3223 = vmatprep.subr.mxu0 %v3833_v0 }
 0x2ff   :  { %3224 = vmatpush3.msra.mxu0 %v3954_v6 }
 0x300   :  { %3239 = vmatprep.subr.mxu0 %v3833_v0 }
 0x3b8   :  { %v368_v28 = vpop.f32.mrf.mxu0 }
 0x3b9   :  { %v373_v29 = vrot.slane %v368_v28, 7 }
 0x3ba   :  { %v3205_v30 = vpop.f32.mrf.mxu0 }
 0x3bb   :  { %v375_v31 = vadd.f32 %v373_v29, %v3984_v10 }
 0x3bd   :  { %3492 = vtanh.f32 %v375_v31  ;;  %v3000_v33 = vmul.f32 -1.442695, %v375_v31 }
 0x3bf   :  { %3494 = vpow2.f32 %v3000_v33 }
 0x3ca   :  { %v3493_v32 = vpop.eup %3492 }
 0x3cb   :  { %388 = vrot.lane.b32.xlu0 %v3493_v32, %s3835_s24 }
 0x3cc   :  { %v3495_v34 = vpop.eup %3494 }
 0x3cd   :  { %v379_v35 = vadd.f32 1.0, %v3495_v34 }
 0x3cf   :  { %3496 = vrcp.f32 %v379_v35 }
 0x3dc   :  { %v3497_v36 = vpop.eup %3496 }
 0x3dd   :  { %v386_v40 = vmul.f32 %v3497_v36, %v384_v39 }
 0x43d   :  { %v389_v37 = vpop.permute.xlu0 %388 }
 0x43e   :  { %v391_v38 = vmul.f32 %v3497_v36, %v389_v37 }
 0x440   :  { %393 = vrot.lane.b32.xlu1 %v391_v38, %s3836_s3 }
 0x4b2   :  { %v394_v41 = vpop.permute.xlu1 %393 }
 0x4b3   :  { %v396_v42 = vadd.f32 %v394_v41, %v386_v40 }
 0x4b5   :  { %3498 = vtanh.f32 %v396_v42  ;;  %v491_v59 = vrot.slane %v396_v42, 7 }
 0x4c2   :  { %v3499_v43 = vpop.eup %3498 }
 0x4c3   :  { %399 = vrot.lane.b32.xlu0 %v3499_v43, %s3835_s24 }
 0x535   :  { %v400_v44 = vpop.permute.xlu0 %399 }
 0x536   :  { %v402_v45 = vmul.f32 %v3497_v36, %v400_v44 }
 0x538   :  { %v404_v46 = vrot.slane %v402_v45, 1  ;;  %v1046_v7 = vsel %vm1045_vm4, %v3990_v26, %v402_v45 }
 0x53a   :  { %405 = vrot.lane.b32.xlu1 %v404_v46, %s3836_s3 }
 0x5ac   :  { %v406_v47 = vpop.permute.xlu1 %405 }
 0x5ad   :  { %3215 = vmatmul.mubr.msk.f32.vlgmr.msra.gmra.mxu1 %vm198_vm3, %v406_v47 }
 0x5ae   :  { %3229 = vmatpush3.msra.mxu1 %v3936_v1  ;;  %3236 = vmatprep.mubr.msk.f32.mxu1 %vm3834_vm0, %v3833_v0 }
 0x5af   :  { %3230 = vmatprep.subr.mxu1 %v3833_v0 }
 0x5b0   :  { %3231 = vmatpush3.msra.mxu1 %v3941_v3 }
 0x5b1   :  { %3232 = vmatprep.subr.mxu1 %v3833_v0 }
 0x5b2   :  { %3233 = vmatpush3.msra.mxu1 %v3949_v5 }
 0x5b3   :  { %3234 = vmatprep.subr.mxu1 %v3833_v0 }
 0x5b4   :  { %3235 = vmatpush3.msra.mxu1 %v3954_v6 }
 0x5b5   :  { %3250 = vmatprep.subr.mxu1 %v3833_v0 }
 0x66d   :  { %v475_v48 = vpop.f32.mrf.mxu1 }
 0x66e   :  { %v480_v49 = vrot.slane %v475_v48, 6 }
 0x66f   :  { %v3216_v50 = vpop.f32.mrf.mxu1 }
 0x670   :  { %v482_v51 = vadd.f32 %v480_v49, %v3984_v10 }
 0x672   :  { %3500 = vtanh.f32 %v482_v51  ;;  %v3002_v53 = vmul.f32 -1.442695, %v482_v51 }
 0x674   :  { %3502 = vpow2.f32 %v3002_v53 }
 0x67f   :  { %v3501_v52 = vpop.eup %3500 }
 0x680   :  { %495 = vrot.lane.b32.xlu0 %v3501_v52, %s3835_s24 }
 0x681   :  { %v3503_v54 = vpop.eup %3502 }
 0x682   :  { %v486_v55 = vadd.f32 1.0, %v3503_v54 }
 0x684   :  { %3504 = vrcp.f32 %v486_v55 }
 0x691   :  { %v3505_v56 = vpop.eup %3504 }
 0x692   :  { %v493_v60 = vmul.f32 %v3505_v56, %v491_v59 }
 0x6f2   :  { %v496_v57 = vpop.permute.xlu0 %495 }
 0x6f3   :  { %v498_v58 = vmul.f32 %v3505_v56, %v496_v57 }
 0x6f5   :  { %500 = vrot.lane.b32.xlu1 %v498_v58, %s3836_s3 }
 0x767   :  { %v501_v61 = vpop.permute.xlu1 %500 }
 0x768   :  { %v503_v62 = vadd.f32 %v501_v61, %v493_v60 }
 0x76a   :  { %3506 = vtanh.f32 %v503_v62  ;;  %v598_v23 = vrot.slane %v503_v62, 7 }
 0x777   :  { %v3507_v63 = vpop.eup %3506 }
 0x778   :  { %506 = vrot.lane.b32.xlu0 %v3507_v63, %s3835_s24 }
 0x7ea   :  { %v507_v2 = vpop.permute.xlu0 %506 }
 0x7eb   :  { %v509_v4 = vmul.f32 %v3505_v56, %v507_v2 }
 0x7ed   :  { %v511_v8 = vrot.slane %v509_v4, 2  ;;  %v1048_v9 = vsel %vm1047_vm5, %v1046_v7, %v509_v4 }
 0x7ef   :  { %512 = vrot.lane.b32.xlu1 %v511_v8, %s3836_s3 }
 0x861   :  { %v513_v11 = vpop.permute.xlu1 %512 }
 0x862   :  { %3226 = vmatmul.mubr.msk.f32.vlgmr.msra.gmra.mxu0 %vm198_vm3, %v513_v11 }
 0x863   :  { %3240 = vmatpush3.msra.mxu0 %v3936_v1  ;;  %3247 = vmatprep.mubr.msk.f32.mxu0 %vm3834_vm0, %v3833_v0 }
 0x864   :  { %3241 = vmatprep.subr.mxu0 %v3833_v0 }
 0x865   :  { %3242 = vmatpush3.msra.mxu0 %v3941_v3 }
 0x866   :  { %3243 = vmatprep.subr.mxu0 %v3833_v0 }
 0x867   :  { %3244 = vmatpush3.msra.mxu0 %v3949_v5 }
 0x868   :  { %3245 = vmatprep.subr.mxu0 %v3833_v0 }
 0x869   :  { %3246 = vmatpush3.msra.mxu0 %v3954_v6 }
 0x86a   :  { %3261 = vmatprep.subr.mxu0 %v3833_v0 }
 0x922   :  { %v582_v12 = vpop.f32.mrf.mxu0 }
 0x923   :  { %v587_v13 = vrot.slane %v582_v12, 5 }
 0x924   :  { %v3227_v14 = vpop.f32.mrf.mxu0 }
 0x925   :  { %v589_v15 = vadd.f32 %v587_v13, %v3984_v10 }
 0x927   :  { %3508 = vtanh.f32 %v589_v15  ;;  %v3004_v17 = vmul.f32 -1.442695, %v589_v15 }
 0x929   :  { %3510 = vpow2.f32 %v3004_v17 }
 0x934   :  { %v3509_v16 = vpop.eup %3508 }
 0x935   :  { %602 = vrot.lane.b32.xlu0 %v3509_v16, %s3835_s24 }
 0x936   :  { %v3511_v18 = vpop.eup %3510 }
 0x937   :  { %v593_v19 = vadd.f32 1.0, %v3511_v18 }
 0x939   :  { %3512 = vrcp.f32 %v593_v19 }
 0x946   :  { %v3513_v20 = vpop.eup %3512 }
 0x947   :  { %v600_v24 = vmul.f32 %v3513_v20, %v598_v23 }
 0x9a7   :  { %v603_v21 = vpop.permute.xlu0 %602 }
 0x9a8   :  { %v605_v22 = vmul.f32 %v3513_v20, %v603_v21 }
 0x9aa   :  { %607 = vrot.lane.b32.xlu1 %v605_v22, %s3836_s3 }
 0xa1c   :  { %v608_v25 = vpop.permute.xlu1 %607 }
 0xa1d   :  { %v610_v26 = vadd.f32 %v608_v25, %v600_v24 }
 0xa1f   :  { %3514 = vtanh.f32 %v610_v26  ;;  %v705_v44 = vrot.slane %v610_v26, 7 }
 0xa2c   :  { %v3515_v27 = vpop.eup %3514 }
 0xa2d   :  { %613 = vrot.lane.b32.xlu0 %v3515_v27, %s3835_s24 }
 0xa9f   :  { %v614_v28 = vpop.permute.xlu0 %613 }
 0xaa0   :  { %v616_v29 = vmul.f32 %v3513_v20, %v614_v28 }
 0xaa2   :  { %v618_v30 = vrot.slane %v616_v29, 3  ;;  %v1050_v31 = vsel %vm1049_vm6, %v1048_v9, %v616_v29 }
 0xaa4   :  { %619 = vrot.lane.b32.xlu1 %v618_v30, %s3836_s3 }
 0xb16   :  { %v620_v32 = vpop.permute.xlu1 %619 }
 0xb17   :  { %3237 = vmatmul.mubr.msk.f32.vlgmr.msra.gmra.mxu1 %vm198_vm3, %v620_v32 }
 0xb18   :  { %3251 = vmatpush3.msra.mxu1 %v3936_v1  ;;  %3258 = vmatprep.mubr.msk.f32.mxu1 %vm3834_vm0, %v3833_v0 }
 0xb19   :  { %3252 = vmatprep.subr.mxu1 %v3833_v0 }
 0xb1a   :  { %3253 = vmatpush3.msra.mxu1 %v3941_v3 }
 0xb1b   :  { %3254 = vmatprep.subr.mxu1 %v3833_v0 }
 0xb1c   :  { %3255 = vmatpush3.msra.mxu1 %v3949_v5 }
 0xb1d   :  { %3256 = vmatprep.subr.mxu1 %v3833_v0 }
 0xb1e   :  { %3257 = vmatpush3.msra.mxu1 %v3954_v6 }
 0xb1f   :  { %3272 = vmatprep.subr.mxu1 %v3833_v0 }
 0xbd7   :  { %v689_v33 = vpop.f32.mrf.mxu1 }
 0xbd8   :  { %v694_v34 = vrot.slane %v689_v33, 4 }
 0xbd9   :  { %v3238_v35 = vpop.f32.mrf.mxu1 }
 0xbda   :  { %v696_v36 = vadd.f32 %v694_v34, %v3984_v10 }
 0xbdc   :  { %3516 = vtanh.f32 %v696_v36  ;;  %v3006_v38 = vmul.f32 -1.442695, %v696_v36 }
 0xbde   :  { %3518 = vpow2.f32 %v3006_v38 }
 0xbe9   :  { %v3517_v37 = vpop.eup %3516 }
 0xbea   :  { %709 = vrot.lane.b32.xlu0 %v3517_v37, %s3835_s24 }
 0xbeb   :  { %v3519_v39 = vpop.eup %3518 }
 0xbec   :  { %v700_v40 = vadd.f32 1.0, %v3519_v39 }
 0xbee   :  { %3520 = vrcp.f32 %v700_v40 }
 0xbfb   :  { %v3521_v41 = vpop.eup %3520 }
 0xbfc   :  { %v707_v45 = vmul.f32 %v3521_v41, %v705_v44 }
 0xc5c   :  { %v710_v42 = vpop.permute.xlu0 %709 }
 0xc5d   :  { %v712_v43 = vmul.f32 %v3521_v41, %v710_v42 }
 0xc5f   :  { %714 = vrot.lane.b32.xlu1 %v712_v43, %s3836_s3 }
 0xcd1   :  { %v715_v46 = vpop.permute.xlu1 %714 }
 0xcd2   :  { %v717_v47 = vadd.f32 %v715_v46, %v707_v45 }
 0xcd4   :  { %3522 = vtanh.f32 %v717_v47 }
 0xce1   :  { %v3523_v48 = vpop.eup %3522 }
 0xce2   :  { %720 = vrot.lane.b32.xlu0 %v3523_v48, %s3835_s24 }
 0xd54   :  { %v721_v49 = vpop.permute.xlu0 %720 }
 0xd55   :  { %v723_v50 = vmul.f32 %v3521_v41, %v721_v49  ;;  %v4100_v49 = vld [vmem:[#allocation7 + $0x18] sm:$0xff] }
 0xd57   :  { %v725_v51 = vrot.slane %v723_v50, 4  ;;  %v1051_v52 = vsel %vm120_vm1, %v1050_v31, %v723_v50  ;;  %v1060_v50 = vld [vmem:[#allocation5 + $0x10] sm:$0xff] }
 0xd59   :  { %726 = vrot.lane.b32.xlu1 %v725_v51, %s3836_s3  ;;  %v4103_v51 = vld [vmem:[#allocation7 + $0x10] sm:$0xff] }
 0xdcb   :  { %v727_v53 = vpop.permute.xlu1 %726 }
 0xdcc   :  { %3248 = vmatmul.mubr.msk.f32.vlgmr.msra.gmra.mxu0 %vm198_vm3, %v727_v53  ;;  %v4107_v53 = vld [vmem:[#allocation7 + $0x8] sm:$0xff] }
 0xdcd   :  { %3262 = vmatpush3.msra.mxu0 %v3936_v1  ;;  %3269 = vmatprep.mubr.msk.f32.mxu0 %vm3834_vm0, %v3833_v0 }
 0xdce   :  { %3263 = vmatprep.subr.mxu0 %v3833_v0 }
 0xdcf   :  { %3264 = vmatpush3.msra.mxu0 %v3941_v3 }
 0xdd0   :  { %3265 = vmatprep.subr.mxu0 %v3833_v0 }
 0xdd1   :  { %3266 = vmatpush3.msra.mxu0 %v3949_v5 }
 0xdd2   :  { %3267 = vmatprep.subr.mxu0 %v3833_v0 }
 0xdd3   :  { %3268 = vmatpush3.msra.mxu0 %v3954_v6  ;;  %v812_v6 = vrot.slane %v717_v47, 7 }
 0xdd4   :  { %3283 = vmatprep.subr.mxu0 %v3833_v0 }
 0xe8c   :  { %v796_v54 = vpop.f32.mrf.mxu0 }
 0xe8d   :  { %v801_v55 = vrot.slane %v796_v54, 3  ;;  %v1058_v54 = vld [vmem:[#allocation5] sm:$0xff] }
 0xe8e   :  { %v3249_v1 = vpop.f32.mrf.mxu0 }
 0xe8f   :  { %v803_v56 = vadd.f32 %v801_v55, %v3984_v10  ;;  %v4112_v55 = vld [vmem:[#allocation7] sm:$0xff] }
 0xe91   :  { %3524 = vtanh.f32 %v803_v56  ;;  %v3008_v3 = vmul.f32 -1.442695, %v803_v56 }
 0xe93   :  { %3526 = vpow2.f32 %v3008_v3 }
 0xe9e   :  { %v3525_v57 = vpop.eup %3524 }
 0xe9f   :  { %816 = vrot.lane.b32.xlu0 %v3525_v57, %s3835_s24 }
 0xea0   :  { %v3527_v58 = vpop.eup %3526 }
 0xea1   :  { %v807_v59 = vadd.f32 1.0, %v3527_v58 }
 0xea3   :  { %3528 = vrcp.f32 %v807_v59 }
 0xeb0   :  { %v3529_v5 = vpop.eup %3528 }
 0xeb1   :  { %v814_v62 = vmul.f32 %v3529_v5, %v812_v6 }
 0xf11   :  { %v817_v60 = vpop.permute.xlu0 %816 }
 0xf12   :  { %v819_v61 = vmul.f32 %v3529_v5, %v817_v60  ;;  %v3013_v60 = vld [vmem:[%s4437_s6] ss:$0 sm:$0xff] }
 0xf14   :  { %821 = vrot.lane.b32.xlu1 %v819_v61, %s3836_s3 }
 0xf86   :  { %v822_v63 = vpop.permute.xlu1 %821 }
 0xf87   :  { %v824_v2 = vadd.f32 %v822_v63, %v814_v62 }
 0xf89   :  { %3530 = vtanh.f32 %v824_v2  ;;  %v919_v24 = vrot.slane %v824_v2, 7 }
 0xf96   :  { %v3531_v4 = vpop.eup %3530 }
 0xf97   :  { %827 = vrot.lane.b32.xlu0 %v3531_v4, %s3835_s24 }
0x1009   :  { %v828_v7 = vpop.permute.xlu0 %827 }
0x100a   :  { %v830_v8 = vmul.f32 %v3529_v5, %v828_v7 }
0x100c   :  { %v832_v9 = vrot.slane %v830_v8, 5  ;;  %v1053_v11 = vsel %vm1052_vm7, %v1051_v52, %v830_v8  ;;  %v1059_v52 = vld [vmem:[#allocation5 + $0x8] sm:$0xff] }
0x100e   :  { %833 = vrot.lane.b32.xlu1 %v832_v9, %s3836_s3 }
0x1080   :  { %v834_v12 = vpop.permute.xlu1 %833 }
0x1081   :  { %3259 = vmatmul.mubr.msk.f32.vlgmr.msra.gmra.mxu1 %vm198_vm3, %v834_v12 }
0x1082   :  { %3280 = vmatprep.mubr.msk.f32.mxu1 %vm3834_vm0, %v3833_v0 }
0x1141   :  { %v903_v13 = vpop.f32.mrf.mxu1 }
0x1142   :  { %v908_v14 = vrot.slane %v903_v13, 2 }
0x1143   :  { %v3260_v15 = vpop.f32.mrf.mxu1 }
0x1144   :  { %v910_v16 = vadd.f32 %v908_v14, %v3984_v10 }
0x1146   :  { %3532 = vtanh.f32 %v910_v16  ;;  %v3010_v18 = vmul.f32 -1.442695, %v910_v16 }
0x1148   :  { %3534 = vpow2.f32 %v3010_v18 }
0x1153   :  { %v3533_v17 = vpop.eup %3532 }
0x1154   :  { %923 = vrot.lane.b32.xlu0 %v3533_v17, %s3835_s24 }
0x1155   :  { %v3535_v19 = vpop.eup %3534 }
0x1156   :  { %v914_v20 = vadd.f32 1.0, %v3535_v19 }
0x1158   :  { %3536 = vrcp.f32 %v914_v20 }
0x1165   :  { %v3537_v21 = vpop.eup %3536 }
0x1166   :  { %v921_v25 = vmul.f32 %v3537_v21, %v919_v24 }
0x11c6   :  { %v924_v22 = vpop.permute.xlu0 %923 }
0x11c7   :  { %v926_v23 = vmul.f32 %v3537_v21, %v924_v22 }
0x11c9   :  { %928 = vrot.lane.b32.xlu1 %v926_v23, %s3836_s3 }
0x123b   :  { %v929_v26 = vpop.permute.xlu1 %928 }
0x123c   :  { %v931_v27 = vadd.f32 %v929_v26, %v921_v25 }
0x123e   :  { %3538 = vtanh.f32 %v931_v27  ;;  %v1026_v45 = vrot.slane %v931_v27, 7 }
0x124b   :  { %v3539_v28 = vpop.eup %3538 }
0x124c   :  { %934 = vrot.lane.b32.xlu0 %v3539_v28, %s3835_s24 }
0x12be   :  { %v935_v29 = vpop.permute.xlu0 %934 }
0x12bf   :  { %v937_v30 = vmul.f32 %v3537_v21, %v935_v29 }
0x12c1   :  { %v939_v31 = vrot.slane %v937_v30, 6  ;;  %v4088_v32 = vsel %vm1054_vm8, %v1053_v11, %v937_v30 }
0x12c3   :  { %940 = vrot.lane.b32.xlu1 %v939_v31, %s3836_s3 }
0x1335   :  { %v941_v33 = vpop.permute.xlu1 %940 }
0x1336   :  { %3270 = vmatmul.mubr.msk.f32.vlgmr.msra.gmra.mxu0 %vm198_vm3, %v941_v33 }
0x1337   :  { %3291 = vmatprep.mubr.msk.f32.mxu0 %vm3834_vm0, %v3833_v0  ;;  %3284 = vmatpush3.msra.mxu0 %v4100_v49 }
0x1338   :  { %3285 = vmatprep.subr.mxu0 %v3833_v0 }
0x1339   :  { %3286 = vmatpush3.msra.mxu0 %v4103_v51 }
0x133a   :  { %3287 = vmatprep.subr.mxu0 %v3833_v0 }
0x133b   :  { %3288 = vmatpush3.msra.mxu0 %v4107_v53 }
0x133c   :  { %3289 = vmatprep.subr.mxu0 %v3833_v0 }
0x133d   :  { %3290 = vmatpush3.msra.mxu0 %v4112_v55 }
0x133e   :  { %3292 = vmatmul.mubr.f32.vlgmr.msra.gmra.mxu0 %v3833_v0  ;;  %3305 = vmatprep.subr.mxu0 %v3833_v0 }
0x133f   :  { %3313 = vmatprep.mubr.msk.f32.mxu0 %vm3834_vm0, %v3833_v0  ;;  %3306 = vmatpush3.msra.mxu0 %v4100_v49 }
0x1340   :  { %3307 = vmatprep.subr.mxu0 %v3833_v0 }
0x1341   :  { %3308 = vmatpush3.msra.mxu0 %v4103_v51 }
0x1342   :  { %3309 = vmatprep.subr.mxu0 %v3833_v0 }
0x1343   :  { %3310 = vmatpush3.msra.mxu0 %v4107_v53 }
0x1344   :  { %3311 = vmatprep.subr.mxu0 %v3833_v0 }
0x1345   :  { %3312 = vmatpush3.msra.mxu0 %v4112_v55 }
0x1346   :  { %3327 = vmatprep.subr.mxu0 %v3833_v0 }
0x13f6   :  { %v1010_v34 = vpop.f32.mrf.mxu0 }
0x13f7   :  { %v1015_v35 = vrot.slane %v1010_v34, 1 }
0x13f8   :  { %v3271_v36 = vpop.f32.mrf.mxu0 }
0x13f9   :  { %v1017_v37 = vadd.f32 %v1015_v35, %v3984_v10  ;;  %v1061_v10 = vld [vmem:[#allocation5 + $0x18] sm:$0xff] }
0x13fa   :  { %3273 = vmatpush3.msra.mxu1 %v1061_v10 }
0x13fb   :  { %3540 = vtanh.f32 %v1017_v37  ;;  %v3012_v39 = vmul.f32 -1.442695, %v1017_v37  ;;  %3274 = vmatprep.subr.mxu1 %v3833_v0 }
0x13fc   :  { %3275 = vmatpush3.msra.mxu1 %v1060_v50 }
0x13fd   :  { %3542 = vpow2.f32 %v3012_v39  ;;  %3276 = vmatprep.subr.mxu1 %v3833_v0 }
0x13fe   :  { %3277 = vmatpush3.msra.mxu1 %v1059_v52  ;;  %v1214_v59 = vpop.f32.mrf.mxu0 }
0x13ff   :  { %3278 = vmatprep.subr.mxu1 %v3833_v0 }
0x1400   :  { %3279 = vmatpush3.msra.mxu1 %v1058_v54  ;;  %v3293_v5 = vpop.f32.mrf.mxu0 }
0x1401   :  { %3294 = vmatprep.subr.mxu1 %v3833_v0 }
0x1408   :  { %v3541_v38 = vpop.eup %3540 }
0x1409   :  { %1030 = vrot.lane.b32.xlu0 %v3541_v38, %s3835_s24 }
0x140a   :  { %v3543_v40 = vpop.eup %3542 }
0x140b   :  { %v1021_v41 = vadd.f32 1.0, %v3543_v40 }
0x140d   :  { %3544 = vrcp.f32 %v1021_v41 }
0x141a   :  { %v3545_v42 = vpop.eup %3544 }
0x141b   :  { %v1028_v46 = vmul.f32 %v3545_v42, %v1026_v45 }
0x147b   :  { %v1031_v43 = vpop.permute.xlu0 %1030 }
0x147c   :  { %v1033_v44 = vmul.f32 %v3545_v42, %v1031_v43 }
0x147e   :  { %1035 = vrot.lane.b32.xlu1 %v1033_v44, %s3836_s3 }
0x14f0   :  { %v1036_v47 = vpop.permute.xlu1 %1035 }
0x14f1   :  { %v4097_v48 = vadd.f32 %v1036_v47, %v1028_v46 }
0x14f3   :  { %3546 = vtanh.f32 %v4097_v48 }
0x1500   :  { %v3547_v1 = vpop.eup %3546 }
0x1501   :  { %1041 = vrot.lane.b32.xlu0 %v3547_v1, %s3835_s24 }
0x1573   :  { %v1042_v56 = vpop.permute.xlu0 %1041 }
0x1574   :  { %v4132_v57 = vmul.f32 %v3545_v42, %v1042_v56 }
0x1576   :  { %v1057_v3 = vsel %vm1056_vm9, %v4088_v32, %v4132_v57 }
0x1577   :  { %1070 = vrot.lane.b32.xlu1 %v1057_v3, %s3836_s3 }
0x15e9   :  { %v1071_v58 = vpop.permute.xlu1 %1070 }
0x15ea   :  { %3281 = vmatmul.mubr.msk.f32.vlgmr.msra.gmra.mxu1 %vm198_vm3, %v1071_v58 }
0x15eb   :  { %3295 = vmatpush3.msra.mxu1 %v4100_v49  ;;  %3302 = vmatprep.mubr.msk.f32.mxu1 %vm3834_vm0, %v3833_v0 }
0x15ec   :  { %3296 = vmatprep.subr.mxu1 %v3833_v0 }
0x15ed   :  { %3297 = vmatpush3.msra.mxu1 %v4103_v51 }
0x15ee   :  { %3298 = vmatprep.subr.mxu1 %v3833_v0 }
0x15ef   :  { %3299 = vmatpush3.msra.mxu1 %v4107_v53 }
0x15f0   :  { %3300 = vmatprep.subr.mxu1 %v3833_v0 }
0x15f1   :  { %3301 = vmatpush3.msra.mxu1 %v4112_v55 }
0x15f2   :  { %3316 = vmatprep.subr.mxu1 %v3833_v0 }
0x16aa   :  { %v1140_v61 = vpop.f32.mrf.mxu1 }
0x16ab   :  { %v4152_v6 = vadd.f32 %v3013_v60, %v1140_v61 }
0x16ac   :  { %v3282_v62 = vpop.f32.mrf.mxu1 }
0x16ad   :  { %v1218_v63 = vadd.f32 %v1214_v59, %v4152_v6 }
0x16af   :  { %3548 = vtanh.f32 %v1218_v63  ;;  %v3015_v4 = vmul.f32 -1.442695, %v1218_v63 }
0x16b1   :  { %3550 = vpow2.f32 %v3015_v4 }
0x16bc   :  { %v3549_v2 = vpop.eup %3548 }
0x16bd   :  { %1228 = vrot.lane.b32.xlu0 %v3549_v2, %s3835_s24 }
0x16be   :  { %v3551_v7 = vpop.eup %3550 }
0x16bf   :  { %v1222_v8 = vadd.f32 1.0, %v3551_v7 }
0x16c1   :  { %3552 = vrcp.f32 %v1222_v8 }
0x16ce   :  { %v3553_v9 = vpop.eup %3552 }
0x16cf   :  { %v1226_v13 = vmul.f32 0.0, %v3553_v9 }
0x172f   :  { %v1229_v11 = vpop.permute.xlu0 %1228 }
0x1730   :  { %v1231_v12 = vmul.f32 %v3553_v9, %v1229_v11 }
0x1732   :  { %1233 = vrot.lane.b32.xlu1 %v1231_v12, %s3836_s3 }
0x17a4   :  { %v1234_v14 = vpop.permute.xlu1 %1233 }
0x17a5   :  { %v1236_v15 = vadd.f32 %v1234_v14, %v1226_v13 }
0x17a7   :  { %3554 = vtanh.f32 %v1236_v15  ;;  %v1330_v31 = vrot.slane %v1236_v15, 7 }
0x17b4   :  { %v3555_v16 = vpop.eup %3554 }
0x17b5   :  { %1239 = vrot.lane.b32.xlu0 %v3555_v16, %s3835_s24 }
0x1827   :  { %v1240_v17 = vpop.permute.xlu0 %1239 }
0x1828   :  { %v4158_v18 = vmul.f32 %v3553_v9, %v1240_v17 }
0x182a   :  { %1244 = vrot.lane.b32.xlu1 %v4158_v18, %s3836_s3 }
0x189c   :  { %v1245_v19 = vpop.permute.xlu1 %1244 }
0x189d   :  { %3303 = vmatmul.mubr.msk.f32.vlgmr.msra.gmra.mxu1 %vm198_vm3, %v1245_v19 }
0x189e   :  { %3317 = vmatpush3.msra.mxu1 %v4100_v49  ;;  %3324 = vmatprep.mubr.msk.f32.mxu1 %vm3834_vm0, %v3833_v0 }
0x189f   :  { %3318 = vmatprep.subr.mxu1 %v3833_v0 }
0x18a0   :  { %3319 = vmatpush3.msra.mxu1 %v4103_v51 }
0x18a1   :  { %3320 = vmatprep.subr.mxu1 %v3833_v0 }
0x18a2   :  { %3321 = vmatpush3.msra.mxu1 %v4107_v53 }
0x18a3   :  { %3322 = vmatprep.subr.mxu1 %v3833_v0 }
0x18a4   :  { %3323 = vmatpush3.msra.mxu1 %v4112_v55 }
0x18a5   :  { %3338 = vmatprep.subr.mxu1 %v3833_v0 }
0x195d   :  { %v1314_v20 = vpop.f32.mrf.mxu1 }
0x195e   :  { %v1319_v21 = vrot.slane %v1314_v20, 7 }
0x195f   :  { %v3304_v22 = vpop.f32.mrf.mxu1 }
0x1960   :  { %v1321_v23 = vadd.f32 %v1319_v21, %v4152_v6 }
0x1962   :  { %3556 = vtanh.f32 %v1321_v23  ;;  %v3017_v25 = vmul.f32 -1.442695, %v1321_v23 }
0x1964   :  { %3558 = vpow2.f32 %v3017_v25 }
0x196f   :  { %v3557_v24 = vpop.eup %3556 }
0x1970   :  { %1334 = vrot.lane.b32.xlu0 %v3557_v24, %s3835_s24 }
0x1971   :  { %v3559_v26 = vpop.eup %3558 }
0x1972   :  { %v1325_v27 = vadd.f32 1.0, %v3559_v26 }
0x1974   :  { %3560 = vrcp.f32 %v1325_v27 }
0x1981   :  { %v3561_v28 = vpop.eup %3560 }
0x1982   :  { %v1332_v32 = vmul.f32 %v3561_v28, %v1330_v31 }
0x19e2   :  { %v1335_v29 = vpop.permute.xlu0 %1334 }
0x19e3   :  { %v1337_v30 = vmul.f32 %v3561_v28, %v1335_v29 }
0x19e5   :  { %1339 = vrot.lane.b32.xlu1 %v1337_v30, %s3836_s3 }
0x1a57   :  { %v1340_v33 = vpop.permute.xlu1 %1339 }
0x1a58   :  { %v1342_v34 = vadd.f32 %v1340_v33, %v1332_v32 }
0x1a5a   :  { %3562 = vtanh.f32 %v1342_v34  ;;  %v1437_v54 = vrot.slane %v1342_v34, 7 }
0x1a67   :  { %v3563_v35 = vpop.eup %3562 }
0x1a68   :  { %1345 = vrot.lane.b32.xlu0 %v3563_v35, %s3835_s24 }
0x1ada   :  { %v1346_v36 = vpop.permute.xlu0 %1345 }
0x1adb   :  { %v1348_v37 = vmul.f32 %v3561_v28, %v1346_v36 }
0x1add   :  { %v1350_v38 = vrot.slane %v1348_v37, 1  ;;  %v1991_v60 = vsel %vm1045_vm4, %v4158_v18, %v1348_v37 }
0x1adf   :  { %1351 = vrot.lane.b32.xlu1 %v1350_v38, %s3836_s3 }
0x1b51   :  { %v1352_v39 = vpop.permute.xlu1 %1351 }
0x1b52   :  { %3314 = vmatmul.mubr.msk.f32.vlgmr.msra.gmra.mxu0 %vm198_vm3, %v1352_v39 }
0x1b53   :  { %3328 = vmatpush3.msra.mxu0 %v4100_v49  ;;  %3335 = vmatprep.mubr.msk.f32.mxu0 %vm3834_vm0, %v3833_v0 }
0x1b54   :  { %3329 = vmatprep.subr.mxu0 %v3833_v0 }
0x1b55   :  { %3330 = vmatpush3.msra.mxu0 %v4103_v51 }
0x1b56   :  { %3331 = vmatprep.subr.mxu0 %v3833_v0 }
0x1b57   :  { %3332 = vmatpush3.msra.mxu0 %v4107_v53 }
0x1b58   :  { %3333 = vmatprep.subr.mxu0 %v3833_v0 }
0x1b59   :  { %3334 = vmatpush3.msra.mxu0 %v4112_v55 }
0x1b5a   :  { %3349 = vmatprep.subr.mxu0 %v3833_v0 }
0x1c12   :  { %v1421_v40 = vpop.f32.mrf.mxu0 }
0x1c13   :  { %v1426_v41 = vrot.slane %v1421_v40, 6 }
0x1c14   :  { %v3315_v42 = vpop.f32.mrf.mxu0 }
0x1c15   :  { %v1428_v43 = vadd.f32 %v1426_v41, %v4152_v6 }
0x1c17   :  { %3564 = vtanh.f32 %v1428_v43  ;;  %v3019_v45 = vmul.f32 -1.442695, %v1428_v43 }
0x1c19   :  { %3566 = vpow2.f32 %v3019_v45 }
0x1c24   :  { %v3565_v44 = vpop.eup %3564 }
0x1c25   :  { %1441 = vrot.lane.b32.xlu0 %v3565_v44, %s3835_s24 }
0x1c26   :  { %v3567_v46 = vpop.eup %3566 }
0x1c27   :  { %v1432_v47 = vadd.f32 1.0, %v3567_v46 }
0x1c29   :  { %3568 = vrcp.f32 %v1432_v47 }
0x1c36   :  { %v3569_v10 = vpop.eup %3568 }
0x1c37   :  { %v1439_v1 = vmul.f32 %v3569_v10, %v1437_v54 }
0x1c97   :  { %v1442_v50 = vpop.permute.xlu0 %1441 }
0x1c98   :  { %v1444_v52 = vmul.f32 %v3569_v10, %v1442_v50 }
0x1c9a   :  { %1446 = vrot.lane.b32.xlu1 %v1444_v52, %s3836_s3 }
0x1d0c   :  { %v1447_v56 = vpop.permute.xlu1 %1446 }
0x1d0d   :  { %v1449_v3 = vadd.f32 %v1447_v56, %v1439_v1 }
0x1d0f   :  { %3570 = vtanh.f32 %v1449_v3  ;;  %v1544_v17 = vrot.slane %v1449_v3, 7 }
0x1d1c   :  { %v3571_v58 = vpop.eup %3570 }
0x1d1d   :  { %1452 = vrot.lane.b32.xlu0 %v3571_v58, %s3835_s24 }
0x1d8f   :  { %v1453_v59 = vpop.permute.xlu0 %1452 }
0x1d90   :  { %v1455_v5 = vmul.f32 %v3569_v10, %v1453_v59 }
0x1d92   :  { %v1457_v61 = vrot.slane %v1455_v5, 2  ;;  %v1992_v62 = vsel %vm1047_vm5, %v1991_v60, %v1455_v5 }
0x1d94   :  { %1458 = vrot.lane.b32.xlu1 %v1457_v61, %s3836_s3 }
0x1e06   :  { %v1459_v63 = vpop.permute.xlu1 %1458 }
0x1e07   :  { %3325 = vmatmul.mubr.msk.f32.vlgmr.msra.gmra.mxu1 %vm198_vm3, %v1459_v63 }
0x1e08   :  { %3339 = vmatpush3.msra.mxu1 %v4100_v49  ;;  %3346 = vmatprep.mubr.msk.f32.mxu1 %vm3834_vm0, %v3833_v0 }
0x1e09   :  { %3340 = vmatprep.subr.mxu1 %v3833_v0 }
0x1e0a   :  { %3341 = vmatpush3.msra.mxu1 %v4103_v51 }
0x1e0b   :  { %3342 = vmatprep.subr.mxu1 %v3833_v0 }
0x1e0c   :  { %3343 = vmatpush3.msra.mxu1 %v4107_v53 }
0x1e0d   :  { %3344 = vmatprep.subr.mxu1 %v3833_v0 }
0x1e0e   :  { %3345 = vmatpush3.msra.mxu1 %v4112_v55 }
0x1e0f   :  { %3360 = vmatprep.subr.mxu1 %v3833_v0 }
0x1ec7   :  { %v1528_v2 = vpop.f32.mrf.mxu1 }
0x1ec8   :  { %v1533_v4 = vrot.slane %v1528_v2, 5 }
0x1ec9   :  { %v3326_v7 = vpop.f32.mrf.mxu1 }
0x1eca   :  { %v1535_v8 = vadd.f32 %v1533_v4, %v4152_v6 }
0x1ecc   :  { %3572 = vtanh.f32 %v1535_v8  ;;  %v3021_v11 = vmul.f32 -1.442695, %v1535_v8 }
0x1ece   :  { %3574 = vpow2.f32 %v3021_v11 }
0x1ed9   :  { %v3573_v9 = vpop.eup %3572 }
0x1eda   :  { %1548 = vrot.lane.b32.xlu0 %v3573_v9, %s3835_s24 }
0x1edb   :  { %v3575_v12 = vpop.eup %3574 }
0x1edc   :  { %v1539_v13 = vadd.f32 1.0, %v3575_v12 }
0x1ede   :  { %3576 = vrcp.f32 %v1539_v13 }
0x1eeb   :  { %v3577_v14 = vpop.eup %3576 }
0x1eec   :  { %v1546_v18 = vmul.f32 %v3577_v14, %v1544_v17 }
0x1f4c   :  { %v1549_v15 = vpop.permute.xlu0 %1548 }
0x1f4d   :  { %v1551_v16 = vmul.f32 %v3577_v14, %v1549_v15 }
0x1f4f   :  { %1553 = vrot.lane.b32.xlu1 %v1551_v16, %s3836_s3 }
0x1fc1   :  { %v1554_v19 = vpop.permute.xlu1 %1553 }
0x1fc2   :  { %v1556_v20 = vadd.f32 %v1554_v19, %v1546_v18 }
0x1fc4   :  { %3578 = vtanh.f32 %v1556_v20  ;;  %v1651_v38 = vrot.slane %v1556_v20, 7 }
0x1fd1   :  { %v3579_v21 = vpop.eup %3578 }
0x1fd2   :  { %1559 = vrot.lane.b32.xlu0 %v3579_v21, %s3835_s24 }
0x2044   :  { %v1560_v22 = vpop.permute.xlu0 %1559 }
0x2045   :  { %v1562_v23 = vmul.f32 %v3577_v14, %v1560_v22 }
0x2047   :  { %v1564_v24 = vrot.slane %v1562_v23, 3  ;;  %v1993_v25 = vsel %vm1049_vm6, %v1992_v62, %v1562_v23 }
0x2049   :  { %1565 = vrot.lane.b32.xlu1 %v1564_v24, %s3836_s3 }
0x20bb   :  { %v1566_v26 = vpop.permute.xlu1 %1565 }
0x20bc   :  { %3336 = vmatmul.mubr.msk.f32.vlgmr.msra.gmra.mxu0 %vm198_vm3, %v1566_v26 }
0x20bd   :  { %3350 = vmatpush3.msra.mxu0 %v4100_v49  ;;  %3357 = vmatprep.mubr.msk.f32.mxu0 %vm3834_vm0, %v3833_v0 }
0x20be   :  { %3351 = vmatprep.subr.mxu0 %v3833_v0 }
0x20bf   :  { %3352 = vmatpush3.msra.mxu0 %v4103_v51 }
0x20c0   :  { %3353 = vmatprep.subr.mxu0 %v3833_v0 }
0x20c1   :  { %3354 = vmatpush3.msra.mxu0 %v4107_v53 }
0x20c2   :  { %3355 = vmatprep.subr.mxu0 %v3833_v0 }
0x20c3   :  { %3356 = vmatpush3.msra.mxu0 %v4112_v55 }
0x20c4   :  { %3371 = vmatprep.subr.mxu0 %v3833_v0 }
0x217c   :  { %v1635_v27 = vpop.f32.mrf.mxu0 }
0x217d   :  { %v1640_v28 = vrot.slane %v1635_v27, 4 }
0x217e   :  { %v3337_v29 = vpop.f32.mrf.mxu0 }
0x217f   :  { %v1642_v30 = vadd.f32 %v1640_v28, %v4152_v6 }
0x2181   :  { %3580 = vtanh.f32 %v1642_v30  ;;  %v3023_v32 = vmul.f32 -1.442695, %v1642_v30 }
0x2183   :  { %3582 = vpow2.f32 %v3023_v32 }
0x218e   :  { %v3581_v31 = vpop.eup %3580 }
0x218f   :  { %1655 = vrot.lane.b32.xlu0 %v3581_v31, %s3835_s24 }
0x2190   :  { %v3583_v33 = vpop.eup %3582 }
0x2191   :  { %v1646_v34 = vadd.f32 1.0, %v3583_v33 }
0x2193   :  { %3584 = vrcp.f32 %v1646_v34 }
0x21a0   :  { %v3585_v35 = vpop.eup %3584 }
0x21a1   :  { %v1653_v39 = vmul.f32 %v3585_v35, %v1651_v38 }
0x2201   :  { %v1656_v36 = vpop.permute.xlu0 %1655 }
0x2202   :  { %v1658_v37 = vmul.f32 %v3585_v35, %v1656_v36 }
0x2204   :  { %1660 = vrot.lane.b32.xlu1 %v1658_v37, %s3836_s3 }
0x2276   :  { %v1661_v40 = vpop.permute.xlu1 %1660 }
0x2277   :  { %v1663_v41 = vadd.f32 %v1661_v40, %v1653_v39 }
0x2279   :  { %3586 = vtanh.f32 %v1663_v41 }
0x2286   :  { %v3587_v42 = vpop.eup %3586 }
0x2287   :  { %1666 = vrot.lane.b32.xlu0 %v3587_v42, %s3835_s24 }
0x22f9   :  { %v1667_v43 = vpop.permute.xlu0 %1666 }
0x22fa   :  { %v1669_v44 = vmul.f32 %v3585_v35, %v1667_v43 }
0x22fc   :  { %v1671_v45 = vrot.slane %v1669_v44, 4  ;;  %v1994_v46 = vsel %vm120_vm1, %v1993_v25, %v1669_v44 }
0x22fe   :  { %1672 = vrot.lane.b32.xlu1 %v1671_v45, %s3836_s3 }
0x2370   :  { %v1673_v47 = vpop.permute.xlu1 %1672 }
0x2371   :  { %3347 = vmatmul.mubr.msk.f32.vlgmr.msra.gmra.mxu1 %vm198_vm3, %v1673_v47  ;;  %v2001_v47 = vld [vmem:[#allocation8 + $0x18] sm:$0xff] }
0x2372   :  { %3361 = vmatpush3.msra.mxu1 %v4100_v49  ;;  %3368 = vmatprep.mubr.msk.f32.mxu1 %vm3834_vm0, %v3833_v0 }
0x2373   :  { %3362 = vmatprep.subr.mxu1 %v3833_v0 }
0x2374   :  { %3363 = vmatpush3.msra.mxu1 %v4103_v51 }
0x2375   :  { %3364 = vmatprep.subr.mxu1 %v3833_v0 }
0x2376   :  { %3365 = vmatpush3.msra.mxu1 %v4107_v53 }
0x2377   :  { %3366 = vmatprep.subr.mxu1 %v3833_v0 }
0x2378   :  { %3367 = vmatpush3.msra.mxu1 %v4112_v55  ;;  %v1758_v55 = vrot.slane %v1663_v41, 7 }
0x2379   :  { %3382 = vmatprep.subr.mxu1 %v3833_v0 }
0x2431   :  { %v1742_v10 = vpop.f32.mrf.mxu1 }
0x2432   :  { %v1747_v50 = vrot.slane %v1742_v10, 3  ;;  %v4269_v10 = vld [vmem:[#allocation10 + $0x18] sm:$0xff] }
0x2433   :  { %v3348_v49 = vpop.f32.mrf.mxu1 }
0x2434   :  { %v1749_v52 = vadd.f32 %v1747_v50, %v4152_v6  ;;  %v2000_v50 = vld [vmem:[#allocation8 + $0x10] sm:$0xff] }
0x2435   :  { %v4272_v49 = vld [vmem:[#allocation10 + $0x10] sm:$0xff] }
0x2436   :  { %3588 = vtanh.f32 %v1749_v52  ;;  %v3025_v51 = vmul.f32 -1.442695, %v1749_v52  ;;  %v1999_v52 = vld [vmem:[#allocation8 + $0x8] sm:$0xff] }
0x2438   :  { %3590 = vpow2.f32 %v3025_v51  ;;  %v4281_v51 = vld [vmem:[#allocation10] sm:$0xff] }
0x2443   :  { %v3589_v54 = vpop.eup %3588 }
0x2444   :  { %1762 = vrot.lane.b32.xlu0 %v3589_v54, %s3835_s24  ;;  %v1998_v54 = vld [vmem:[#allocation8] sm:$0xff] }
0x2445   :  { %v3591_v1 = vpop.eup %3590 }
0x2446   :  { %v1753_v56 = vadd.f32 1.0, %v3591_v1 }
0x2448   :  { %3592 = vrcp.f32 %v1753_v56 }
0x2455   :  { %v3593_v53 = vpop.eup %3592 }
0x2456   :  { %v1760_v59 = vmul.f32 %v3593_v53, %v1758_v55 }
0x24b6   :  { %v1763_v3 = vpop.permute.xlu0 %1762 }
0x24b7   :  { %v1765_v58 = vmul.f32 %v3593_v53, %v1763_v3  ;;  %v2932_v3 = vrot.slane %v4132_v57, 7 }
0x24b9   :  { %1767 = vrot.lane.b32.xlu1 %v1765_v58, %s3836_s3 }
0x252b   :  { %v1768_v5 = vpop.permute.xlu1 %1767 }
0x252c   :  { %v1770_v60 = vadd.f32 %v1768_v5, %v1760_v59 }
0x252e   :  { %3594 = vtanh.f32 %v1770_v60  ;;  %v1865_v20 = vrot.slane %v1770_v60, 7 }
0x253b   :  { %v3595_v61 = vpop.eup %3594 }
0x253c   :  { %1773 = vrot.lane.b32.xlu0 %v3595_v61, %s3835_s24  ;;  %v3030_v61 = vld [vmem:[%s4440_s9] ss:$0 sm:$0xff]  ;;  %s3837_s9 = smov 96  }
0x25ae   :  { %v1774_v62 = vpop.permute.xlu0 %1773 }
0x25af   :  { %v1776_v63 = vmul.f32 %v3593_v53, %v1774_v62 }
0x25b1   :  { %v1778_v2 = vrot.slane %v1776_v63, 5  ;;  %v1995_v4 = vsel %vm1052_vm7, %v1994_v46, %v1776_v63 }
0x25b3   :  { %1779 = vrot.lane.b32.xlu1 %v1778_v2, %s3836_s3 }
0x2625   :  { %v1780_v7 = vpop.permute.xlu1 %1779 }
0x2626   :  { %3358 = vmatmul.mubr.msk.f32.vlgmr.msra.gmra.mxu0 %vm198_vm3, %v1780_v7 }
0x2627   :  { %3379 = vmatprep.mubr.msk.f32.mxu0 %vm3834_vm0, %v3833_v0  ;;  %3372 = vmatpush3.msra.mxu0 %v2001_v47 }
0x2628   :  { %3373 = vmatprep.subr.mxu0 %v3833_v0 }
0x2629   :  { %3374 = vmatpush3.msra.mxu0 %v2000_v50 }
0x262a   :  { %3375 = vmatprep.subr.mxu0 %v3833_v0 }
0x262b   :  { %3376 = vmatpush3.msra.mxu0 %v1999_v52 }
0x262c   :  { %3377 = vmatprep.subr.mxu0 %v3833_v0 }
0x262d   :  { %3378 = vmatpush3.msra.mxu0 %v1998_v54 }
0x262e   :  { %3393 = vmatprep.subr.mxu0 %v3833_v0 }
0x26e6   :  { %v1849_v8 = vpop.f32.mrf.mxu0 }
0x26e7   :  { %v1854_v9 = vrot.slane %v1849_v8, 2 }
0x26e8   :  { %v3359_v11 = vpop.f32.mrf.mxu0 }
0x26e9   :  { %v1856_v12 = vadd.f32 %v1854_v9, %v4152_v6 }
0x26eb   :  { %3596 = vtanh.f32 %v1856_v12  ;;  %v3027_v14 = vmul.f32 -1.442695, %v1856_v12 }
0x26ed   :  { %3598 = vpow2.f32 %v3027_v14 }
0x26f8   :  { %v3597_v13 = vpop.eup %3596 }
0x26f9   :  { %1869 = vrot.lane.b32.xlu0 %v3597_v13, %s3835_s24 }
0x26fa   :  { %v3599_v15 = vpop.eup %3598 }
0x26fb   :  { %v1860_v16 = vadd.f32 1.0, %v3599_v15 }
0x26fd   :  { %3600 = vrcp.f32 %v1860_v16 }
0x270a   :  { %v3601_v17 = vpop.eup %3600 }
0x270b   :  { %v1867_v21 = vmul.f32 %v3601_v17, %v1865_v20 }
0x276b   :  { %v1870_v18 = vpop.permute.xlu0 %1869 }
0x276c   :  { %v1872_v19 = vmul.f32 %v3601_v17, %v1870_v18 }
0x276e   :  { %1874 = vrot.lane.b32.xlu1 %v1872_v19, %s3836_s3 }
0x27e0   :  { %v1875_v22 = vpop.permute.xlu1 %1874 }
0x27e1   :  { %v1877_v23 = vadd.f32 %v1875_v22, %v1867_v21 }
0x27e3   :  { %3602 = vtanh.f32 %v1877_v23  ;;  %v1972_v41 = vrot.slane %v1877_v23, 7 }
0x27f0   :  { %v3603_v24 = vpop.eup %3602 }
0x27f1   :  { %1880 = vrot.lane.b32.xlu0 %v3603_v24, %s3835_s24 }
0x2863   :  { %v1881_v25 = vpop.permute.xlu0 %1880 }
0x2864   :  { %v1883_v26 = vmul.f32 %v3601_v17, %v1881_v25 }
0x2866   :  { %v1885_v27 = vrot.slane %v1883_v26, 6  ;;  %v4256_v28 = vsel %vm1054_vm8, %v1995_v4, %v1883_v26 }
0x2868   :  { %1886 = vrot.lane.b32.xlu1 %v1885_v27, %s3836_s3 }
0x28da   :  { %v1887_v29 = vpop.permute.xlu1 %1886 }
0x28db   :  { %3369 = vmatmul.mubr.msk.f32.vlgmr.msra.gmra.mxu1 %vm198_vm3, %v1887_v29 }
0x28dc   :  { %3390 = vmatprep.mubr.msk.f32.mxu1 %vm3834_vm0, %v3833_v0  ;;  %3383 = vmatpush3.msra.mxu1 %v4269_v10 }
0x28dd   :  { %3384 = vmatprep.subr.mxu1 %v3833_v0 }
0x28de   :  { %3385 = vmatpush3.msra.mxu1 %v4272_v49 }
0x28df   :  { %3386 = vmatprep.subr.mxu1 %v3833_v0 }
0x299b   :  { %v1956_v30 = vpop.f32.mrf.mxu1 }
0x299c   :  { %v1961_v31 = vrot.slane %v1956_v30, 1 }
0x299d   :  { %v3370_v32 = vpop.f32.mrf.mxu1 }
0x299e   :  { %v1963_v33 = vadd.f32 %v1961_v31, %v4152_v6  ;;  %v2949_v6 = vrot.slane %v4097_v48, 7  ;;  %v4276_v48 = vld [vmem:[#allocation10 + $0x8] sm:$0xff] }
0x299f   :  { %3387 = vmatpush3.msra.mxu1 %v4276_v48 }
0x29a0   :  { %3604 = vtanh.f32 %v1963_v33  ;;  %v3029_v35 = vmul.f32 -1.442695, %v1963_v33  ;;  %3388 = vmatprep.subr.mxu1 %v3833_v0 }
0x29a1   :  { %3389 = vmatpush3.msra.mxu1 %v4281_v51 }
0x29a2   :  { %3606 = vpow2.f32 %v3029_v35  ;;  %3391 = vmatmul.mubr.f32.vlgmr.msra.gmra.mxu1 %v3833_v0  ;;  %3404 = vmatprep.subr.mxu1 %v3833_v0 }
0x29a3   :  { %3412 = vmatprep.mubr.msk.f32.mxu1 %vm3834_vm0, %v3833_v0  ;;  %3405 = vmatpush3.msra.mxu1 %v4269_v10 }
0x29a4   :  { %3406 = vmatprep.subr.mxu1 %v3833_v0 }
0x29a5   :  { %3407 = vmatpush3.msra.mxu1 %v4272_v49 }
0x29a6   :  { %3408 = vmatprep.subr.mxu1 %v3833_v0 }
0x29a7   :  { %3409 = vmatpush3.msra.mxu1 %v4276_v48 }
0x29a8   :  { %3410 = vmatprep.subr.mxu1 %v3833_v0 }
0x29a9   :  { %3411 = vmatpush3.msra.mxu1 %v4281_v51 }
0x29aa   :  { %3426 = vmatprep.subr.mxu1 %v3833_v0 }
0x29ad   :  { %v3605_v34 = vpop.eup %3604 }
0x29ae   :  { %1976 = vrot.lane.b32.xlu0 %v3605_v34, %s3835_s24 }
0x29af   :  { %v3607_v36 = vpop.eup %3606 }
0x29b0   :  { %v1967_v37 = vadd.f32 1.0, %v3607_v36 }
0x29b2   :  { %3608 = vrcp.f32 %v1967_v37 }
0x29bf   :  { %v3609_v38 = vpop.eup %3608 }
0x29c0   :  { %v1974_v42 = vmul.f32 %v3609_v38, %v1972_v41 }
0x2a20   :  { %v1977_v39 = vpop.permute.xlu0 %1976 }
0x2a21   :  { %v1979_v40 = vmul.f32 %v3609_v38, %v1977_v39 }
0x2a23   :  { %1981 = vrot.lane.b32.xlu1 %v1979_v40, %s3836_s3 }
0x2a62   :  { %v2154_v57 = vpop.f32.mrf.mxu1 }
0x2a64   :  { %v3392_v60 = vpop.f32.mrf.mxu1 }
0x2a95   :  { %v1982_v43 = vpop.permute.xlu1 %1981 }
0x2a96   :  { %v1984_v44 = vadd.f32 %v1982_v43, %v1974_v42 }
0x2a98   :  { %3610 = vtanh.f32 %v1984_v44  ;;  %v2952_v45 = vrot.slane %v1984_v44, 6 }
0x2a9a   :  { %v4267_v46 = vsel %vm1045_vm4, %v2949_v6, %v2952_v45 }
0x2aa5   :  { %v3611_v1 = vpop.eup %3610 }
0x2aa6   :  { %1987 = vrot.lane.b32.xlu0 %v3611_v1, %s3835_s24 }
0x2b18   :  { %v1988_v56 = vpop.permute.xlu0 %1987 }
0x2b19   :  { %v1990_v53 = vmul.f32 %v3609_v38, %v1988_v56 }
0x2b1b   :  { %v2935_v58 = vrot.slane %v1990_v53, 6  ;;  %v1997_v55 = vsel %vm1056_vm9, %v4256_v28, %v1990_v53 }
0x2b1c   :  { %2010 = vrot.lane.b32.xlu1 %v1997_v55, %s3836_s3 }
0x2b1d   :  { %v4306_v59 = vsel %vm1045_vm4, %v2932_v3, %v2935_v58 }
0x2b8e   :  { %v2011_v5 = vpop.permute.xlu1 %2010 }
0x2b8f   :  { %3380 = vmatmul.mubr.msk.f32.vlgmr.msra.gmra.mxu0 %vm198_vm3, %v2011_v5 }
0x2b90   :  { %3394 = vmatpush3.msra.mxu0 %v4269_v10  ;;  %3401 = vmatprep.mubr.msk.f32.mxu0 %vm3834_vm0, %v3833_v0 }
0x2b91   :  { %3395 = vmatprep.subr.mxu0 %v3833_v0 }
0x2b92   :  { %3396 = vmatpush3.msra.mxu0 %v4272_v49 }
0x2b93   :  { %3397 = vmatprep.subr.mxu0 %v3833_v0 }
0x2b94   :  { %3398 = vmatpush3.msra.mxu0 %v4276_v48 }
0x2b95   :  { %3399 = vmatprep.subr.mxu0 %v3833_v0 }
0x2b96   :  { %3400 = vmatpush3.msra.mxu0 %v4281_v51 }
0x2b97   :  { %3415 = vmatprep.subr.mxu0 %v3833_v0 }
0x2c4f   :  { %v2080_v62 = vpop.f32.mrf.mxu0 }
0x2c50   :  { %v4322_v63 = vadd.f32 %v3030_v61, %v2080_v62 }
0x2c51   :  { %v3381_v2 = vpop.f32.mrf.mxu0 }
0x2c52   :  { %v2158_v4 = vadd.f32 %v2154_v57, %v4322_v63 }
0x2c54   :  { %3612 = vtanh.f32 %v2158_v4  ;;  %v3032_v8 = vmul.f32 -1.442695, %v2158_v4 }
0x2c56   :  { %3614 = vpow2.f32 %v3032_v8 }
0x2c61   :  { %v3613_v7 = vpop.eup %3612 }
0x2c62   :  { %2168 = vrot.lane.b32.xlu0 %v3613_v7, %s3835_s24 }
0x2c63   :  { %v3615_v9 = vpop.eup %3614 }
0x2c64   :  { %v2162_v11 = vadd.f32 1.0, %v3615_v9 }
0x2c66   :  { %3616 = vrcp.f32 %v2162_v11 }
0x2c73   :  { %v3617_v12 = vpop.eup %3616 }
0x2c74   :  { %v2166_v15 = vmul.f32 0.0, %v3617_v12 }
0x2cd4   :  { %v2169_v13 = vpop.permute.xlu0 %2168 }
0x2cd5   :  { %v2171_v14 = vmul.f32 %v3617_v12, %v2169_v13 }
0x2cd7   :  { %2173 = vrot.lane.b32.xlu1 %v2171_v14, %s3836_s3 }
0x2d49   :  { %v2174_v16 = vpop.permute.xlu1 %2173 }
0x2d4a   :  { %v2176_v17 = vadd.f32 %v2174_v16, %v2166_v15 }
0x2d4c   :  { %3618 = vtanh.f32 %v2176_v17  ;;  %v2270_v33 = vrot.slane %v2176_v17, 7 }
0x2d59   :  { %v3619_v18 = vpop.eup %3618 }
0x2d5a   :  { %2179 = vrot.lane.b32.xlu0 %v3619_v18, %s3835_s24 }
0x2dcc   :  { %v2180_v19 = vpop.permute.xlu0 %2179 }
0x2dcd   :  { %v2182_v20 = vmul.f32 %v3617_v12, %v2180_v19 }
0x2dcf   :  { %2184 = vrot.lane.b32.xlu1 %v2182_v20, %s3836_s3 }
0x2e41   :  { %v2185_v21 = vpop.permute.xlu1 %2184 }
0x2e42   :  { %3402 = vmatmul.mubr.msk.f32.vlgmr.msra.gmra.mxu0 %vm198_vm3, %v2185_v21 }
0x2e43   :  { %3416 = vmatpush3.msra.mxu0 %v4269_v10  ;;  %3423 = vmatprep.mubr.msk.f32.mxu0 %vm3834_vm0, %v3833_v0 }
0x2e44   :  { %3417 = vmatprep.subr.mxu0 %v3833_v0 }
0x2e45   :  { %3418 = vmatpush3.msra.mxu0 %v4272_v49 }
0x2e46   :  { %3419 = vmatprep.subr.mxu0 %v3833_v0 }
0x2e47   :  { %3420 = vmatpush3.msra.mxu0 %v4276_v48 }
0x2e48   :  { %3421 = vmatprep.subr.mxu0 %v3833_v0 }
0x2e49   :  { %3422 = vmatpush3.msra.mxu0 %v4281_v51 }
0x2e4a   :  { %3437 = vmatprep.subr.mxu0 %v3833_v0 }
0x2f02   :  { %v2254_v22 = vpop.f32.mrf.mxu0 }
0x2f03   :  { %v2259_v23 = vrot.slane %v2254_v22, 7 }
0x2f04   :  { %v3403_v24 = vpop.f32.mrf.mxu0 }
0x2f05   :  { %v2261_v25 = vadd.f32 %v2259_v23, %v4322_v63 }
0x2f07   :  { %3620 = vtanh.f32 %v2261_v25  ;;  %v3034_v27 = vmul.f32 -1.442695, %v2261_v25 }
0x2f09   :  { %3622 = vpow2.f32 %v3034_v27 }
0x2f14   :  { %v3621_v26 = vpop.eup %3620 }
0x2f15   :  { %2274 = vrot.lane.b32.xlu0 %v3621_v26, %s3835_s24 }
0x2f16   :  { %v3623_v28 = vpop.eup %3622 }
0x2f17   :  { %v2265_v29 = vadd.f32 1.0, %v3623_v28 }
0x2f19   :  { %3624 = vrcp.f32 %v2265_v29 }
0x2f26   :  { %v3625_v30 = vpop.eup %3624 }
0x2f27   :  { %v2272_v34 = vmul.f32 %v3625_v30, %v2270_v33 }
0x2f87   :  { %v2275_v31 = vpop.permute.xlu0 %2274 }
0x2f88   :  { %v2277_v32 = vmul.f32 %v3625_v30, %v2275_v31 }
0x2f8a   :  { %2279 = vrot.lane.b32.xlu1 %v2277_v32, %s3836_s3 }
0x2ffc   :  { %v2280_v35 = vpop.permute.xlu1 %2279 }
0x2ffd   :  { %v2282_v36 = vadd.f32 %v2280_v35, %v2272_v34 }
0x2fff   :  { %3626 = vtanh.f32 %v2282_v36  ;;  %v2377_v53 = vrot.slane %v2282_v36, 7 }
0x300c   :  { %v3627_v37 = vpop.eup %3626 }
0x300d   :  { %2285 = vrot.lane.b32.xlu0 %v3627_v37, %s3835_s24 }
0x307f   :  { %v2286_v38 = vpop.permute.xlu0 %2285 }
0x3080   :  { %v2288_v39 = vmul.f32 %v3625_v30, %v2286_v38 }
0x3082   :  { %v2290_v40 = vrot.slane %v2288_v39, 1 }
0x3084   :  { %2291 = vrot.lane.b32.xlu1 %v2290_v40, %s3836_s3 }
0x30f6   :  { %v2292_v41 = vpop.permute.xlu1 %2291 }
0x30f7   :  { %3413 = vmatmul.mubr.msk.f32.vlgmr.msra.gmra.mxu1 %vm198_vm3, %v2292_v41 }
0x30f8   :  { %3427 = vmatpush3.msra.mxu1 %v4269_v10  ;;  %3434 = vmatprep.mubr.msk.f32.mxu1 %vm3834_vm0, %v3833_v0 }
0x30f9   :  { %3428 = vmatprep.subr.mxu1 %v3833_v0 }
0x30fa   :  { %3429 = vmatpush3.msra.mxu1 %v4272_v49 }
0x30fb   :  { %3430 = vmatprep.subr.mxu1 %v3833_v0 }
0x30fc   :  { %3431 = vmatpush3.msra.mxu1 %v4276_v48 }
0x30fd   :  { %3432 = vmatprep.subr.mxu1 %v3833_v0 }
0x30fe   :  { %3433 = vmatpush3.msra.mxu1 %v4281_v51 }
0x30ff   :  { %3448 = vmatprep.subr.mxu1 %v3833_v0 }
0x31b7   :  { %v2361_v42 = vpop.f32.mrf.mxu1 }
0x31b8   :  { %v2366_v43 = vrot.slane %v2361_v42, 6 }
0x31b9   :  { %v3414_v44 = vpop.f32.mrf.mxu1 }
0x31ba   :  { %v2368_v6 = vadd.f32 %v2366_v43, %v4322_v63 }
0x31bc   :  { %3628 = vtanh.f32 %v2368_v6  ;;  %v3036_v47 = vmul.f32 -1.442695, %v2368_v6 }
0x31be   :  { %3630 = vpow2.f32 %v3036_v47 }
0x31c9   :  { %v3629_v45 = vpop.eup %3628 }
0x31ca   :  { %2381 = vrot.lane.b32.xlu0 %v3629_v45, %s3835_s24 }
0x31cb   :  { %v3631_v50 = vpop.eup %3630 }
0x31cc   :  { %v2372_v52 = vadd.f32 1.0, %v3631_v50 }
0x31ce   :  { %3632 = vrcp.f32 %v2372_v52 }
0x31db   :  { %v3633_v54 = vpop.eup %3632 }
0x31dc   :  { %v2379_v3 = vmul.f32 %v3633_v54, %v2377_v53 }
0x323c   :  { %v2382_v1 = vpop.permute.xlu0 %2381 }
0x323d   :  { %v2384_v56 = vmul.f32 %v3633_v54, %v2382_v1 }
0x323f   :  { %2386 = vrot.lane.b32.xlu1 %v2384_v56, %s3836_s3 }
0x32b1   :  { %v2387_v58 = vpop.permute.xlu1 %2386 }
0x32b2   :  { %v2389_v55 = vadd.f32 %v2387_v58, %v2379_v3 }
0x32b4   :  { %3634 = vtanh.f32 %v2389_v55  ;;  %v2484_v17 = vrot.slane %v2389_v55, 7 }
0x32c1   :  { %v3635_v5 = vpop.eup %3634 }
0x32c2   :  { %2392 = vrot.lane.b32.xlu0 %v3635_v5, %s3835_s24 }
0x3334   :  { %v2393_v57 = vpop.permute.xlu0 %2392 }
0x3335   :  { %v2395_v60 = vmul.f32 %v3633_v54, %v2393_v57 }
0x3337   :  { %v2397_v61 = vrot.slane %v2395_v60, 2 }
0x3339   :  { %2398 = vrot.lane.b32.xlu1 %v2397_v61, %s3836_s3 }
0x33ab   :  { %v2399_v62 = vpop.permute.xlu1 %2398 }
0x33ac   :  { %3424 = vmatmul.mubr.msk.f32.vlgmr.msra.gmra.mxu0 %vm198_vm3, %v2399_v62 }
0x33ad   :  { %3438 = vmatpush3.msra.mxu0 %v4269_v10  ;;  %3445 = vmatprep.mubr.msk.f32.mxu0 %vm3834_vm0, %v3833_v0 }
0x33ae   :  { %3439 = vmatprep.subr.mxu0 %v3833_v0 }
0x33af   :  { %3440 = vmatpush3.msra.mxu0 %v4272_v49 }
0x33b0   :  { %3441 = vmatprep.subr.mxu0 %v3833_v0 }
0x33b1   :  { %3442 = vmatpush3.msra.mxu0 %v4276_v48 }
0x33b2   :  { %3443 = vmatprep.subr.mxu0 %v3833_v0 }
0x33b3   :  { %3444 = vmatpush3.msra.mxu0 %v4281_v51 }
0x33b4   :  { %3459 = vmatprep.subr.mxu0 %v3833_v0 }
0x346c   :  { %v2468_v2 = vpop.f32.mrf.mxu0 }
0x346d   :  { %v2473_v4 = vrot.slane %v2468_v2, 5 }
0x346e   :  { %v3425_v7 = vpop.f32.mrf.mxu0 }
0x346f   :  { %v2475_v8 = vadd.f32 %v2473_v4, %v4322_v63 }
0x3471   :  { %3636 = vtanh.f32 %v2475_v8  ;;  %v3038_v11 = vmul.f32 -1.442695, %v2475_v8 }
0x3473   :  { %3638 = vpow2.f32 %v3038_v11 }
0x347e   :  { %v3637_v9 = vpop.eup %3636 }
0x347f   :  { %2488 = vrot.lane.b32.xlu0 %v3637_v9, %s3835_s24 }
0x3480   :  { %v3639_v12 = vpop.eup %3638 }
0x3481   :  { %v2479_v13 = vadd.f32 1.0, %v3639_v12 }
0x3483   :  { %3640 = vrcp.f32 %v2479_v13 }
0x3490   :  { %v3641_v14 = vpop.eup %3640 }
0x3491   :  { %v2486_v18 = vmul.f32 %v3641_v14, %v2484_v17 }
0x34f1   :  { %v2489_v15 = vpop.permute.xlu0 %2488 }
0x34f2   :  { %v2491_v16 = vmul.f32 %v3641_v14, %v2489_v15 }
0x34f4   :  { %2493 = vrot.lane.b32.xlu1 %v2491_v16, %s3836_s3 }
0x3566   :  { %v2494_v19 = vpop.permute.xlu1 %2493 }
0x3567   :  { %v2496_v20 = vadd.f32 %v2494_v19, %v2486_v18 }
0x3569   :  { %3642 = vtanh.f32 %v2496_v20  ;;  %v2591_v37 = vrot.slane %v2496_v20, 7 }
0x3576   :  { %v3643_v21 = vpop.eup %3642 }
0x3577   :  { %2499 = vrot.lane.b32.xlu0 %v3643_v21, %s3835_s24 }
0x35e9   :  { %v2500_v22 = vpop.permute.xlu0 %2499 }
0x35ea   :  { %v2502_v23 = vmul.f32 %v3641_v14, %v2500_v22 }
0x35ec   :  { %v2504_v24 = vrot.slane %v2502_v23, 3 }
0x35ee   :  { %2505 = vrot.lane.b32.xlu1 %v2504_v24, %s3836_s3 }
0x3660   :  { %v2506_v25 = vpop.permute.xlu1 %2505 }
0x3661   :  { %3435 = vmatmul.mubr.msk.f32.vlgmr.msra.gmra.mxu1 %vm198_vm3, %v2506_v25 }
0x3662   :  { %3449 = vmatpush3.msra.mxu1 %v4269_v10  ;;  %3456 = vmatprep.mubr.msk.f32.mxu1 %vm3834_vm0, %v3833_v0 }
0x3663   :  { %3450 = vmatprep.subr.mxu1 %v3833_v0 }
0x3664   :  { %3451 = vmatpush3.msra.mxu1 %v4272_v49 }
0x3665   :  { %3452 = vmatprep.subr.mxu1 %v3833_v0 }
0x3666   :  { %3453 = vmatpush3.msra.mxu1 %v4276_v48 }
0x3667   :  { %3454 = vmatprep.subr.mxu1 %v3833_v0 }
0x3668   :  { %3455 = vmatpush3.msra.mxu1 %v4281_v51 }
0x3721   :  { %v2575_v26 = vpop.f32.mrf.mxu1 }
0x3722   :  { %v2580_v27 = vrot.slane %v2575_v26, 4 }
0x3723   :  { %v3436_v28 = vpop.f32.mrf.mxu1 }
0x3724   :  { %v2582_v29 = vadd.f32 %v2580_v27, %v4322_v63 }
0x3726   :  { %3644 = vtanh.f32 %v2582_v29  ;;  %v3040_v31 = vmul.f32 -1.442695, %v2582_v29 }
0x3728   :  { %3646 = vpow2.f32 %v3040_v31 }
0x3733   :  { %v3645_v30 = vpop.eup %3644 }
0x3734   :  { %2595 = vrot.lane.b32.xlu0 %v3645_v30, %s3835_s24 }
0x3735   :  { %v3647_v32 = vpop.eup %3646 }
0x3736   :  { %v2586_v33 = vadd.f32 1.0, %v3647_v32 }
0x3738   :  { %3648 = vrcp.f32 %v2586_v33 }
0x3745   :  { %v3649_v34 = vpop.eup %3648 }
0x3746   :  { %v2593_v38 = vmul.f32 %v3649_v34, %v2591_v37 }
0x37a6   :  { %v2596_v35 = vpop.permute.xlu0 %2595 }
0x37a7   :  { %v2598_v36 = vmul.f32 %v3649_v34, %v2596_v35 }
0x37a9   :  { %2600 = vrot.lane.b32.xlu1 %v2598_v36, %s3836_s3 }
0x381b   :  { %v2601_v39 = vpop.permute.xlu1 %2600 }
0x381c   :  { %v2603_v40 = vadd.f32 %v2601_v39, %v2593_v38 }
0x381e   :  { %3650 = vtanh.f32 %v2603_v40 }
0x382b   :  { %v3651_v41 = vpop.eup %3650 }
0x382c   :  { %2606 = vrot.lane.b32.xlu0 %v3651_v41, %s3835_s24 }
0x389e   :  { %v2607_v42 = vpop.permute.xlu0 %2606 }
0x389f   :  { %v2609_v43 = vmul.f32 %v3649_v34, %v2607_v42 }
0x38a1   :  { %v2611_v44 = vrot.slane %v2609_v43, 4 }
0x38a3   :  { %2612 = vrot.lane.b32.xlu1 %v2611_v44, %s3836_s3 }
0x3915   :  { %v2613_v6 = vpop.permute.xlu1 %2612 }
0x3916   :  { %3446 = vmatmul.mubr.msk.f32.vlgmr.msra.gmra.mxu0 %vm198_vm3, %v2613_v6 }
0x3917   :  { %3460 = vmatpush3.msra.mxu0 %v4269_v10  ;;  %3467 = vmatprep.mubr.msk.f32.mxu0 %vm3834_vm0, %v3833_v0 }
0x3918   :  { %3461 = vmatprep.subr.mxu0 %v3833_v0 }
0x3919   :  { %3462 = vmatpush3.msra.mxu0 %v4272_v49 }
0x391a   :  { %3463 = vmatprep.subr.mxu0 %v3833_v0 }
0x391b   :  { %3464 = vmatpush3.msra.mxu0 %v4276_v48 }
0x391c   :  { %3465 = vmatprep.subr.mxu0 %v3833_v0  ;;  %v2698_v0 = vrot.slane %v2603_v40, 7 }
0x391d   :  { %3466 = vmatpush3.msra.mxu0 %v4281_v51 }
0x39d6   :  { %v2682_v45 = vpop.f32.mrf.mxu0 }
0x39d7   :  { %v2687_v47 = vrot.slane %v2682_v45, 3 }
0x39d8   :  { %v3447_v50 = vpop.f32.mrf.mxu0 }
0x39d9   :  { %v2689_v10 = vadd.f32 %v2687_v47, %v4322_v63 }
0x39db   :  { %3652 = vtanh.f32 %v2689_v10  ;;  %v3042_v54 = vmul.f32 -1.442695, %v2689_v10 }
0x39dd   :  { %3654 = vpow2.f32 %v3042_v54 }
0x39e8   :  { %v3653_v52 = vpop.eup %3652 }
0x39e9   :  { %2702 = vrot.lane.b32.xlu0 %v3653_v52, %s3835_s24 }
0x39ea   :  { %v3655_v49 = vpop.eup %3654 }
0x39eb   :  { %v2693_v1 = vadd.f32 1.0, %v3655_v49 }
0x39ed   :  { %3656 = vrcp.f32 %v2693_v1 }
0x39fa   :  { %v3657_v56 = vpop.eup %3656 }
0x39fb   :  { %v2700_v51 = vmul.f32 %v3657_v56, %v2698_v0 }
0x3a5b   :  { %v2703_v48 = vpop.permute.xlu0 %2702 }
0x3a5c   :  { %v2705_v53 = vmul.f32 %v3657_v56, %v2703_v48 }
0x3a5e   :  { %2707 = vrot.lane.b32.xlu1 %v2705_v53, %s3836_s3 }
0x3ad0   :  { %v2708_v3 = vpop.permute.xlu1 %2707 }
0x3ad1   :  { %v2710_v58 = vadd.f32 %v2708_v3, %v2700_v51 }
0x3ad3   :  { %3658 = vtanh.f32 %v2710_v58  ;;  %v2805_v16 = vrot.slane %v2710_v58, 7 }
0x3ae0   :  { %v3659_v55 = vpop.eup %3658 }
0x3ae1   :  { %2713 = vrot.lane.b32.xlu0 %v3659_v55, %s3835_s24 }
0x3b53   :  { %v2714_v5 = vpop.permute.xlu0 %2713 }
0x3b54   :  { %v2716_v57 = vmul.f32 %v3657_v56, %v2714_v5 }
0x3b56   :  { %v2718_v60 = vrot.slane %v2716_v57, 5 }
0x3b58   :  { %2719 = vrot.lane.b32.xlu1 %v2718_v60, %s3836_s3 }
0x3bca   :  { %v2720_v61 = vpop.permute.xlu1 %2719 }
0x3bcb   :  { %3457 = vmatmul.mubr.msk.f32.vlgmr.msra.gmra.mxu1 %vm198_vm3, %v2720_v61 }
0x3c8b   :  { %v2789_v62 = vpop.f32.mrf.mxu1 }
0x3c8c   :  { %v2794_v2 = vrot.slane %v2789_v62, 2 }
0x3c8d   :  { %v3458_v4 = vpop.f32.mrf.mxu1 }
0x3c8e   :  { %v2796_v7 = vadd.f32 %v2794_v2, %v4322_v63 }
0x3c90   :  { %3660 = vtanh.f32 %v2796_v7  ;;  %v3044_v9 = vmul.f32 -1.442695, %v2796_v7 }
0x3c92   :  { %3662 = vpow2.f32 %v3044_v9 }
0x3c9d   :  { %v3661_v8 = vpop.eup %3660 }
0x3c9e   :  { %2809 = vrot.lane.b32.xlu0 %v3661_v8, %s3835_s24 }
0x3c9f   :  { %v3663_v11 = vpop.eup %3662 }
0x3ca0   :  { %v2800_v12 = vadd.f32 1.0, %v3663_v11 }
0x3ca2   :  { %3664 = vrcp.f32 %v2800_v12 }
0x3caf   :  { %v3665_v13 = vpop.eup %3664 }
0x3cb0   :  { %v2807_v17 = vmul.f32 %v3665_v13, %v2805_v16 }
0x3d10   :  { %v2810_v14 = vpop.permute.xlu0 %2809 }
0x3d11   :  { %v2812_v15 = vmul.f32 %v3665_v13, %v2810_v14 }
0x3d13   :  { %2814 = vrot.lane.b32.xlu1 %v2812_v15, %s3836_s3 }
0x3d85   :  { %v2815_v18 = vpop.permute.xlu1 %2814 }
0x3d86   :  { %v2817_v19 = vadd.f32 %v2815_v18, %v2807_v17 }
0x3d88   :  { %3666 = vtanh.f32 %v2817_v19  ;;  %v2912_v36 = vrot.slane %v2817_v19, 7 }
0x3d95   :  { %v3667_v20 = vpop.eup %3666 }
0x3d96   :  { %2820 = vrot.lane.b32.xlu0 %v3667_v20, %s3835_s24 }
0x3e08   :  { %v2821_v21 = vpop.permute.xlu0 %2820 }
0x3e09   :  { %v2823_v22 = vmul.f32 %v3665_v13, %v2821_v21 }
0x3e0b   :  { %v2825_v23 = vrot.slane %v2823_v22, 6 }
0x3e0d   :  { %2826 = vrot.lane.b32.xlu1 %v2825_v23, %s3836_s3 }
0x3e7f   :  { %v2827_v24 = vpop.permute.xlu1 %2826 }
0x3e80   :  { %3468 = vmatmul.mubr.msk.f32.vlgmr.msra.gmra.mxu0 %vm198_vm3, %v2827_v24 }
0x3f40   :  { %v2896_v25 = vpop.f32.mrf.mxu0 }
0x3f41   :  { %v2901_v26 = vrot.slane %v2896_v25, 1 }
0x3f42   :  { %v3469_v27 = vpop.f32.mrf.mxu0 }
0x3f43   :  { %v2903_v28 = vadd.f32 %v2901_v26, %v4322_v63 }
0x3f45   :  { %3668 = vtanh.f32 %v2903_v28  ;;  %v3046_v30 = vmul.f32 -1.442695, %v2903_v28 }
0x3f47   :  { %3670 = vpow2.f32 %v3046_v30 }
0x3f52   :  { %v3669_v29 = vpop.eup %3668 }
0x3f53   :  { %2916 = vrot.lane.b32.xlu0 %v3669_v29, %s3835_s24 }
0x3f54   :  { %v3671_v31 = vpop.eup %3670 }
0x3f55   :  { %v2907_v32 = vadd.f32 1.0, %v3671_v31 }
0x3f57   :  { %3672 = vrcp.f32 %v2907_v32 }
0x3f64   :  { %v3673_v33 = vpop.eup %3672 }
0x3f65   :  { %v2914_v37 = vmul.f32 %v3673_v33, %v2912_v36 }
0x3fc5   :  { %v2917_v34 = vpop.permute.xlu0 %2916 }
0x3fc6   :  { %v2919_v35 = vmul.f32 %v3673_v33, %v2917_v34 }
0x3fc8   :  { %2921 = vrot.lane.b32.xlu1 %v2919_v35, %s3836_s3 }
0x403a   :  { %v2922_v38 = vpop.permute.xlu1 %2921 }
0x403b   :  { %v2924_v39 = vadd.f32 %v2922_v38, %v2914_v37 }
0x403d   :  { %3674 = vtanh.f32 %v2924_v39  ;;  %v2955_v63 = vrot.slane %v2924_v39, 5 }
0x403f   :  { %v2958_v40 = vsel %vm1047_vm5, %v4267_v46, %v2955_v63 }
0x404a   :  { %v3675_v41 = vpop.eup %3674 }
0x404b   :  { %2927 = vrot.lane.b32.xlu0 %v3675_v41, %s3835_s24 }
0x404f   :  { %2960 = vrot.lane.b32.xlu0 %v2958_v40, %s3837_s9 }
0x40bd   :  { %v2928_v42 = vpop.permute.xlu0 %2927 }
0x40be   :  { %v2930_v43 = vmul.f32 %v3673_v33, %v2928_v42 }
0x40c0   :  { %v2938_v44 = vrot.slane %v2930_v43, 5 }
0x40c1   :  { %v2961_v6 = vpop.permute.xlu0 %2960 }
0x40c2   :  { %v2941_v45 = vsel %vm1047_vm5, %v4306_v59, %v2938_v44  ;;  %2963 = vst.msk [vmem:[#allocation12] sm:$0x7] %vm2946_vm10, %v2961_v6 }
0x40c3   :  { %2943 = vrot.lane.b32.xlu1 %v2941_v45, %s3836_s3 }
0x40c4   :  { %3787 = shalt.err (!%p3784_p1)
}
0x40c5   :  { %2983 = dma.vmem_to_hbm [thread:$0]  %s2981_s29, 64, %s4442_s11, [#allocation13]  }
0x40c6   :  { %s3839_s4 = smov [#allocation11]  }
0x40c7   :  { %s2970_s14 = sshll.u32 %s3839_s4, 4  ;;  %s2971_s14 = int_to_ptr.vmem [resolvable:$true] %s2970_s14 }
0x40c8   :  { %s3796_s15 = scalar_lea.vmem %s2971_s14, 64  ;;  %p3801_p3 = scmp.lt.s32.totalorder %s2971_s14, %s2971_s14 }
0x40c9   :  { %p3797_p2 = scmp.ne.s32.totalorder %s2971_s14, %s3796_s15  ;;  %p3802_p4 = scmp.lt.s32.totalorder %s3796_s15, %s3796_s15 }
0x40cb   :  { %p3803_p5 = por %p3802_p4, %p3801_p3 }
0x40cd   :  { %p3804_p6 = pnand %p3803_p5, %p3797_p2 }
0x4135   :  { %v2944_v46 = vpop.permute.xlu1 %2943 }
0x4136   :  { %2947 = vst.msk [vmem:[#allocation11] sm:$0x7] %vm2946_vm10, %v2944_v46 }
0x4137   :  { %3807 = shalt.err (!%p3804_p6)
}
0x4138   :  { %2973 = dma.vmem_to_hbm [thread:$0]  %s2971_s14, 64, %s4441_s10, [#allocation4]  }
0x4139   :  { %3822 = dma.done.wait [#allocation4], 64  }
0x413a   :  { %3823 = vsyncadd [#allocation4], 4294967232 }
0x413b   :  { %3824 = dma.done.wait [#allocation13], 64  }
0x413c   :  { %3825 = vsyncadd [#allocation13], 4294967232 }
0x413d   :  { %2990 = vsyncpa [#allocation3], 1 }
0x413e   :  { %2991 = vsyncpa [#allocation6], 1 }
0x413f   :  { %2992 = vsyncpa [#allocation9], 1 }
0x4140   :  { %2993 = vsyncpa [#allocation4], 1 }
0x4141   :  { %2994 = vsyncpa [#allocation13], 1 }

</bundles_post_ra>
